<compile_context>
chip_gen: v6e
topology: v6e:2x2x1
jax: 0.10.0
libtpu: 0.0.40
codegen_flags: <defaults>
</compile_context>

<pallas_src>
import jax
import jax.numpy as jnp
from jax.experimental import pallas as pl
from jax.experimental.pallas import tpu as pltpu


# ----------------------------------------------------------------------------
# Helpers
# ----------------------------------------------------------------------------
def _sigmoid(z):
    # Numerically stable logistic; exp and reciprocal both ride the EUP slot.
    ez = jnp.exp(-jnp.abs(z))
    num = jnp.where(z >= 0, 1.0, ez)
    return num * pl.reciprocal(1.0 + ez, approx=True)


def _choose_tn(N, K, itemsize, max_bytes=2 << 20, min_blocks=4):
    """Largest tn dividing N (multiple of 128) with weight block <= max_bytes
    and at least min_blocks grid steps (so each v7x TC gets >= 2 steps)."""
    assert N % 128 == 0, N
    tn = N
    while ((tn * K * itemsize > max_bytes or (N // tn) < min_blocks)
           and tn % 2 == 0 and (tn // 2) % 128 == 0):
        tn //= 2
    assert N % tn == 0 and tn % 128 == 0, (N, tn)
    return tn


def _block_weight(w, tn):
    """[K, N] -> [nj, K, tn] so block j (= columns j*tn:(j+1)*tn) is contiguous."""
    K, N = w.shape
    nj = N // tn
    return jnp.transpose(w.reshape(K, nj, tn), (1, 0, 2))


def _unblock_weight(wb):
    nj, K, tn = wb.shape
    return jnp.transpose(wb, (1, 0, 2)).reshape(K, nj * tn)


# ----------------------------------------------------------------------------
# Kernel 1: encoder Linear + Sigmoid (4096 -> 1024), full-K, tiled over N.
#   out[:, j*tn:(j+1)*tn] = sigmoid(x @ W_blk[j] + b[:, j*tn:(j+1)*tn])
# ----------------------------------------------------------------------------
def _linear_sigmoid_kernel(x_ref, w_ref, b_ref, o_ref):
    z = jnp.dot(x_ref[...], w_ref[...],
                preferred_element_type=jnp.float32) + b_ref[...]
    o_ref[...] = _sigmoid(z).astype(o_ref.dtype)


def encoder_layer(x_bf16, w_blocked, b, *, out_dtype=jnp.bfloat16):
    M, K = x_bf16.shape
    nj, K2, tn = w_blocked.shape
    assert K == K2
    N = nj * tn
    assert b.shape[-1] == N

    return pl.pallas_call(
        _linear_sigmoid_kernel,
        out_shape=jax.ShapeDtypeStruct((M, N), out_dtype),
        grid_spec=pltpu.PrefetchScalarGridSpec(
            num_scalar_prefetch=0,
            grid=(nj,),
            in_specs=[
                pl.BlockSpec((M, K), lambda j: (0, 0)),          # x (resident)
                pl.BlockSpec((None, K, tn), lambda j: (j, 0, 0)),  # contiguous W block
                pl.BlockSpec((1, tn), lambda j: (0, j)),         # bias slice
            ],
            out_specs=pl.BlockSpec((M, tn), lambda j: (0, j)),
        ),
        compiler_params=pltpu.CompilerParams(
            dimension_semantics=("parallel",)),
    )(x_bf16, w_blocked, b.reshape(1, N))


# ----------------------------------------------------------------------------
# Kernel 2: fused mid layers (1024 -> dim -> 1024) + decoder (1024 -> 4096)
#           + MSE partial sums.  Grid over decoder N axis, fully parallel.
#   Per step j: recompute v2_ / v3_ (tiny), then
#       s   = sigmoid(v3_ @ W_dec_blk[j] + b_dec[j])
#       out = partial sum((s - v1[:, j])^2)   (v3 never hits HBM)
# ----------------------------------------------------------------------------
def _mid_dec_mse_kernel(v2_ref, we2_ref, be2_ref, wd2_ref, bd2_ref,
                        wd_ref, bd_ref, v1_ref, v2o_ref, part_ref):
    # Tiny mid layers, recomputed every grid step (~2 MFLOP) so the N axis can
    # stay "parallel" (both v7x TensorCores stream half of w_dec).
    z1 = jnp.dot(v2_ref[...], we2_ref[...],
                 preferred_element_type=jnp.float32) + be2_ref[...]
    v2_ = _sigmoid(z1)
    v2o_ref[...] = v2_.astype(v2o_ref.dtype)      # identical value every step

    z2 = jnp.dot(v2_.astype(jnp.bfloat16), wd2_ref[...],
                 preferred_element_type=jnp.float32) + bd2_ref[...]
    v3_ = _sigmoid(z2).astype(jnp.bfloat16)

    # Decoder N-block + partial squared-error sum.
    z3 = jnp.dot(v3_, wd_ref[...],
                 preferred_element_type=jnp.float32) + bd_ref[...]
    d = _sigmoid(z3) - v1_ref[...]
    blk_sum = jnp.sum(d * d, keepdims=True)                       # (1, 1)
    M, L = part_ref.shape
    # Spread the block sum over the (M, 128) lane-dense output block so that
    # jnp.sum(partials) in the wrapper recovers the total squared error.
    part_ref[...] = jnp.broadcast_to(blk_sum / (M * L), (M, L))


def mid_dec_mse(v2, w_enc2, b_enc2, w_dec2, b_dec2, w_dec_blocked, b_dec, v1):
    M, H = v2.shape                  # (B, 1024)
    H2, D = w_enc2.shape             # (1024, dim)
    nj, H3, tn = w_dec_blocked.shape
    N = nj * tn                      # 4096
    assert H == H2 == H3 and w_dec2.shape == (D, H)
    assert v1.shape == (M, N) and b_dec.shape[-1] == N

    v2_out, partials = pl.pallas_call(
        _mid_dec_mse_kernel,
        out_shape=(jax.ShapeDtypeStruct((M, D), jnp.float32),
                   jax.ShapeDtypeStruct((M, nj * 128), jnp.float32)),
        grid_spec=pltpu.PrefetchScalarGridSpec(
            num_scalar_prefetch=0,
            grid=(nj,),
            in_specs=[
                pl.BlockSpec((M, H), lambda j: (0, 0)),            # v2 (resident)
                pl.BlockSpec((H, D), lambda j: (0, 0)),            # w_enc2
                pl.BlockSpec((1, D), lambda j: (0, 0)),            # b_enc2
                pl.BlockSpec((D, H), lambda j: (0, 0)),            # w_dec2
                pl.BlockSpec((1, H), lambda j: (0, 0)),            # b_dec2
                pl.BlockSpec((None, H, tn), lambda j: (j, 0, 0)),  # contiguous W_dec block
                pl.BlockSpec((1, tn), lambda j: (0, j)),           # b_dec slice
                pl.BlockSpec((M, tn), lambda j: (0, j)),           # v1 slice (MSE ref)
            ],
            out_specs=(pl.BlockSpec((M, D), lambda j: (0, 0)),     # v2_
                       pl.BlockSpec((M, 128), lambda j: (0, j))),  # MSE partials
        ),
        compiler_params=pltpu.CompilerParams(
            dimension_semantics=("parallel",)),
    )(v2, w_enc2, b_enc2.reshape(1, D), w_dec2, b_dec2.reshape(1, H),
      w_dec_blocked, b_dec.reshape(1, N), v1)

    loss = jnp.sum(partials) / (M * N)
    return v2_out, loss


# ----------------------------------------------------------------------------
# IMG_Encoder module re-implemented with the kernels above.
# ----------------------------------------------------------------------------
class IMGEncoderPallas:
    def __init__(self, dim, entity_count, embedding_dim=4096, hidden=1024,
                 key=jax.random.PRNGKey(0)):
        self.dim = dim
        self.entity_count = entity_count
        self.embedding_dim = embedding_dim
        self.hidden = hidden

        ks = jax.random.split(key, 9)

        def xavier(k, fan_in, fan_out):
            bound = (6.0 / (fan_in + fan_out)) ** 0.5
            return jax.random.uniform(k, (fan_in, fan_out), jnp.float32,
                                      -bound, bound)

        def bias(k, fan_in, fan_out):
            bound = 1.0 / (fan_in ** 0.5)
            return jax.random.uniform(k, (fan_out,), jnp.float32,
                                      -bound, bound)

        # Frozen "visual feature" table; kept f32 since it is the MSE reference.
        # TODO(synk): the original builds this from an `imageid` dict of
        # precomputed image features (host-side data loading) — synthesized here.
        self.visual_embedding = xavier(ks[0], entity_count, embedding_dim)

        itemsize = jnp.dtype(jnp.bfloat16).itemsize
        self.tn_enc = _choose_tn(hidden, embedding_dim, itemsize)
        self.tn_dec = _choose_tn(embedding_dim, hidden, itemsize)

        # Linear weights ([in, out] layout) in bf16 (f32 MXU accumulation);
        # big layers pre-blocked [nj, K, tn] for contiguous per-step DMA.
        self.w_enc = _block_weight(
            xavier(ks[1], embedding_dim, hidden).astype(jnp.bfloat16),
            self.tn_enc)
        self.b_enc = bias(ks[2], embedding_dim, hidden)
        self.w_enc2 = xavier(ks[3], hidden, dim).astype(jnp.bfloat16)
        self.b_enc2 = bias(ks[4], hidden, dim)
        self.w_dec2 = xavier(ks[5], dim, hidden).astype(jnp.bfloat16)
        self.b_dec2 = bias(ks[6], dim, hidden)
        self.w_dec = _block_weight(
            xavier(ks[7], hidden, embedding_dim).astype(jnp.bfloat16),
            self.tn_dec)
        self.b_dec = bias(ks[8], hidden, embedding_dim)

        # TODO(synk): raw_embedding / ent_embeddings exist in the original
        # __init__ but are unused in forward(), so they are omitted here.

    def __call__(self, entity_id):
        # Embedding gather: parameter/setup glue, kept in plain JAX.
        v1 = jnp.take(self.visual_embedding, entity_id, axis=0)   # [B, 4096] f32
        v1_bf16 = v1.astype(jnp.bfloat16)                          # cast once for the MXU
        v2 = encoder_layer(v1_bf16, self.w_enc, self.b_enc)        # [B, 1024] bf16
        v2_, loss = mid_dec_mse(v2, self.w_enc2, self.b_enc2,
                                self.w_dec2, self.b_dec2,
                                self.w_dec, self.b_dec, v1)        # [B, dim] f32, scalar
        return v2_, loss


# ----------------------------------------------------------------------------
# Pure-JAX reference (same bf16-quantized weights) for a loose sanity check.
# ----------------------------------------------------------------------------
def _reference_forward(model, entity_id):
    v1 = jnp.take(model.visual_embedding, entity_id, axis=0)
    w_enc = _unblock_weight(model.w_enc).astype(jnp.float32)
    w_dec = _unblock_weight(model.w_dec).astype(jnp.float32)
    sig = jax.nn.sigmoid
    v2 = sig(v1 @ w_enc + model.b_enc)
    v2_ = sig(v2 @ model.w_enc2.astype(jnp.float32) + model.b_enc2)
    v3_ = sig(v2_ @ model.w_dec2.astype(jnp.float32) + model.b_dec2)
    v3 = sig(v3_ @ w_dec + model.b_dec)
    loss = jnp.mean((v1 - v3) ** 2)
    return v2_, loss


if __name__ == "__main__":
    DIM = 128            # "dim" hyper-parameter of the module (lane-dense)
    ENTITY_COUNT = 16
    BATCH = 8

    model = IMGEncoderPallas(DIM, ENTITY_COUNT, key=jax.random.PRNGKey(0))

    entity_id = jax.random.randint(jax.random.PRNGKey(1), (BATCH,),
                                   0, ENTITY_COUNT, dtype=jnp.int32)

    v2_, loss = model(entity_id)
    jax.block_until_ready((v2_, loss))

    assert v2_.shape == (BATCH, DIM)
    assert loss.shape == ()
    assert bool(jnp.isfinite(loss))
    assert bool(jnp.all(jnp.isfinite(v2_)))

    # Loose tolerance: kernel uses bf16 activations + approx reciprocal.
    v2_ref, loss_ref = _reference_forward(model, entity_id)
    assert bool(jnp.all(jnp.abs(v2_ - v2_ref) < 5e-2)), "v2_ mismatch"
    assert bool(jnp.abs(loss - loss_ref) < 5e-2 * (1.0 + jnp.abs(loss_ref))), "loss mismatch"

    print("KERNEL_OK")
</pallas_src>

<mosaic_0001>
module attributes {stable_mosaic.version = 11 : i64} {
  func.func @_linear_sigmoid_kernel(%arg0: i32, %arg1: memref<8x4096xbf16, #tpu.memory_space<vmem>>, %arg2: memref<1x4096x256xbf16, #tpu.memory_space<vmem>>, %arg3: memref<1x256xf32, #tpu.memory_space<vmem>>, %arg4: memref<8x256xbf16, #tpu.memory_space<vmem>>) attributes {dimension_semantics = [#tpu.dimension_semantics<parallel>], iteration_bounds = array<i64: 4>, scalar_prefetch = 0 : i64, scratch_operands = 0 : i64, tpu.core_type = #tpu.core_type<tc>, window_params = [{pipeline_mode = #tpu.pipeline_mode<synchronous>, transform_indices = @transform_0, window_bounds = array<i64: 8, 4096>}, {transform_indices = @transform_1, window_bounds = array<i64: 1, 4096, 256>}, {transform_indices = @transform_2, window_bounds = array<i64: 1, 256>}, {transform_indices = @transform_3, window_bounds = array<i64: 8, 256>}]} {
    %c0 = arith.constant 0 : index
    %c0_0 = arith.constant 0 : index
    %0 = vector.load %arg1[%c0, %c0_0] : memref<8x4096xbf16, #tpu.memory_space<vmem>>, vector<8x4096xbf16>
    %c0_1 = arith.constant 0 : index
    %c0_2 = arith.constant 0 : index
    %c0_3 = arith.constant 0 : index
    %1 = vector.load %arg2[%c0_1, %c0_2, %c0_3] : memref<1x4096x256xbf16, #tpu.memory_space<vmem>>, vector<1x4096x256xbf16>
    %2 = vector.shape_cast %1 : vector<1x4096x256xbf16> to vector<4096x256xbf16>
    %cst = arith.constant dense<0.000000e+00> : vector<8x256xf32>
    %3 = tpu.matmul %0, %2, %cst {dimension_numbers = #tpu.dot_dimension_numbers<[1], [0], [0], [1], [0, 0, 1, 1], [], []>} : vector<8x4096xbf16>, vector<4096x256xbf16>, vector<8x256xf32> -> vector<8x256xf32>
    %c0_4 = arith.constant 0 : index
    %c0_5 = arith.constant 0 : index
    %4 = vector.load %arg3[%c0_4, %c0_5] : memref<1x256xf32, #tpu.memory_space<vmem>>, vector<1x256xf32>
    %5 = vector.broadcast %4 : vector<1x256xf32> to vector<8x256xf32>
    %6 = arith.addf %3, %5 : vector<8x256xf32>
    %7 = math.absf %6 : vector<8x256xf32>
    %cst_6 = arith.constant 0.000000e+00 : f32
    %8 = vector.broadcast %cst_6 : f32 to vector<8x256xf32>
    %9 = arith.subf %8, %7 : vector<8x256xf32>
    %10 = math.exp %9 : vector<8x256xf32>
    %cst_7 = arith.constant 0.000000e+00 : f32
    %11 = vector.broadcast %cst_7 : f32 to vector<8x256xf32>
    %12 = arith.cmpf oge, %6, %11 : vector<8x256xf32>
    %cst_8 = arith.constant 1.000000e+00 : f32
    %13 = vector.broadcast %cst_8 : f32 to vector<8x256xf32>
    %14 = arith.select %12, %13, %10 : vector<8x256xi1>, vector<8x256xf32>
    %cst_9 = arith.constant 1.000000e+00 : f32
    %15 = vector.broadcast %cst_9 : f32 to vector<8x256xf32>
    %16 = arith.addf %15, %10 : vector<8x256xf32>
    %17 = tpu.reciprocal %16 {approx = true} : vector<8x256xf32> -> vector<8x256xf32>
    %18 = arith.mulf %14, %17 : vector<8x256xf32>
    %19 = arith.truncf %18 : vector<8x256xf32> to vector<8x256xbf16>
    %c0_10 = arith.constant 0 : index
    %c0_11 = arith.constant 0 : index
    %20 = vector.load %arg4[%c0_10, %c0_11] : memref<8x256xbf16, #tpu.memory_space<vmem>>, vector<8x256xbf16>
    tpu.vector_store %arg4[%c0_10, %c0_11], %19 {strides = array<i32>} : memref<8x256xbf16, #tpu.memory_space<vmem>>, vector<8x256xbf16>,
    return
  }
  func.func @transform_0(%arg0: i32) -> (i32, i32) {
    %c0_i32 = arith.constant 0 : i32
    %c0_i32_0 = arith.constant 0 : i32
    %c0_i32_1 = arith.constant 0 : i32
    return %c0_i32, %c0_i32_0 : i32, i32
  }
  func.func @transform_1(%arg0: i32) -> (i32, i32, i32) {
    %c0_i32 = arith.constant 0 : i32
    %c0_i32_0 = arith.constant 0 : i32
    %c0_i32_1 = arith.constant 0 : i32
    return %arg0, %c0_i32, %c0_i32_0 : i32, i32, i32
  }
  func.func @transform_2(%arg0: i32) -> (i32, i32) {
    %c0_i32 = arith.constant 0 : i32
    %c0_i32_0 = arith.constant 0 : i32
    return %c0_i32, %arg0 : i32, i32
  }
  func.func @transform_3(%arg0: i32) -> (i32, i32) {
    %c0_i32 = arith.constant 0 : i32
    %c0_i32_0 = arith.constant 0 : i32
    return %c0_i32, %arg0 : i32, i32
  }
}

</mosaic_0001>

<bundles_post_ra>
// kernel: tpu_custom_call.1
= control target key start
LH: loop header
LB: loop body
LE: loop exit
PB: predicated region body
PF: predicated region fallthrough
CT: control target
= control target key end

     0   :  { %8 = vsyncpa [#allocation3], 0  ;;  %s6702_s0 = inlined_call_operand.hbm [shape: bf16[8,4096], index: 0, kind: input, shape index: {}]   ;;  %s6703_s1 = inlined_call_operand.hbm [shape: bf16[4,4096,256], index: 1, kind: input, shape index: {}]   ;;  %s6704_s2 = inlined_call_operand.hbm [shape: f32[1,1024], index: 2, kind: input, shape index: {}]   ;;  %s6705_s3 = inlined_call_operand.hbm [shape: bf16[8,1024], index: 3, kind: output, shape index: {}]  }
   0x1   :  { %9 = vsyncpa [#allocation6], 0 }
   0x2   :  { %11 = vsyncpa [#allocation6 + $0x1], 0 }
   0x3   :  { %12 = vsyncpa [#allocation4], 0 }
   0x4   :  { %14 = vsyncpa [#allocation4 + $0x1], 0  ;;  %s5870_s12 = smov 0   ;;  %s5872_s13 = smov 0  }
   0x5   :  { %s5874_s14 = smov 0   ;;  %s5876_s15 = smov 0  }
   0x6 LB: > { %s5891_s16 = sadd.s32 1, %s5842_s15   ;;  %s48_s17 = sadd.s32 1, %s5838_s14  ;;  %s5842_s15 = sphi %s5876_s15, %s6727_s15   ;;  %s5838_s14 = sphi %s5874_s14, %s6726_s14   ;;  %s5834_s13 = sphi %s5872_s13, %s6725_s13   ;;  %s5830_s12 = sphi %s5870_s12, %s6724_s12  }
   0x7   : > { %s45_s18 = ssub.s32 %s5842_s15, %s5891_s16  ;;  %p55_p0 = scmp.ne.s32.totalorder %s5838_s14, %s5834_s13 }
   0x8   : > { %p46_p1 = scmp.eq.s32.totalorder %s45_s18, 0  ;;  %p56_p2 = scmp.eq.s32.totalorder %s5842_s15, 0 }
   0x9   : > { %p4846_p3 = scmp.lt.s32.totalorder %s5842_s15, 4  ;;  %s148_s20 = sand.u32 1, %s5842_s15  }
   0xa   : > { %s5901_s19 = scalar_select %p46_p1, %s5838_s14, %s48_s17  }
   0xb   : > { %p57_p4 = por %p56_p2, %p55_p0  ;;  %s150_s21 = sand.u32 1, %s5838_s14  }
   0xc   : > { %s4255_s22 = sshll.u32 %s150_s21, 12  ;;  %s4816_s23 = sshll.u32 %s5842_s15, 16 }
   0xd   : > { %s5914_s26 = scalar_lea.hbm %s6703_s1, %s4816_s23  ;;  %s152_s27 = scalar_lea.vmem [#allocation5], %s4255_s22 }
   0xe   : > { %s159_s28 = sshll.u32 %s152_s27, 4  ;;  %p5916_p5 = pnand %p4846_p3, %p57_p4  ;;  %s5920_s28 = int_to_ptr.vmem [resolvable:$true] %s159_s28 }
   0xf   : > { %s5922_s30 = scalar_lea.sflag [#allocation6], %s148_s20  ;;  %s5692_s4 = scalar_lea.hbm %s5914_s26, 65536 }
  0x10   : > { %p5693_p6 = scmp.ne.s32.totalorder %s5914_s26, %s5692_s4  ;;  %p5694_p7 = pneg %p5916_p5 }
  0x11   : > { %s5697_s7 = scalar_lea.hbm %s6703_s1, 262144  ;;  %p5698_p10 = scmp.lt.s32.totalorder %s5914_s26, %s6703_s1 }
  0x12   : > { %p5695_p8 = pnand %p5694_p7, %p5693_p6  ;;  %p5699_p11 = scmp.lt.s32.totalorder %s5697_s7, %s5692_s4 }
  0x14   : > { %p5696_p9 = pneg %p5695_p8  ;;  %p5700_p12 = por %p5699_p11, %p5698_p10 }
  0x16   : > { %p5701_p13 = pnand %p5700_p12, %p5696_p9 }
  0x18   : > { %5704 = shalt.err (!%p5701_p13)
}
  0x19   : > { %s5705_s10 = scalar_lea.vmem %s5920_s28, 65536  ;;  %s5844_s11 = smov [#allocation5]  }
  0x1a   : > { %p5706_p1 = scmp.ne.s32.totalorder %s5920_s28, %s5705_s10  ;;  %s5710_s17 = sshll.u32 %s5844_s11, 4  ;;  %s5711_s17 = int_to_ptr.vmem [resolvable:$false] %s5710_s17 }
  0x1b   : > { %s5712_s18 = scalar_lea.vmem %s5711_s17, 131072  ;;  %p5713_p4 = scmp.lt.s32.totalorder %s5920_s28, %s5711_s17 }
  0x1c   : > { %p5708_p2 = pnand %p5706_p1, %p5694_p7  ;;  %p5714_p6 = scmp.lt.s32.totalorder %s5712_s18, %s5705_s10 }
  0x1e   : > { %p5709_p3 = pneg %p5708_p2  ;;  %p5715_p8 = por %p5714_p6, %p5713_p4 }
  0x20   : > { %p5716_p10 = pnand %p5715_p8, %p5709_p3 }
  0x22   : > { %5719 = shalt.err (!%p5716_p10)
}
  0x23   : > { %s5845_s20 = smov 128   ;;  %s5846_s22 = smov 8  }
  0x24   : > { %4837 = dma.hbm_to_vmem [thread:$0]  (!%p5916_p5), %s5914_s26, 65536, %s5920_s28, %s5922_s30, %s5845_s20, %s5845_s20, %s5846_s22  }
  0x25   : > { %s5950_s23 = sadd.s32 4294967295, %s5842_s15   ;;  %s4251_s24 = sadd.s32 4294967294, %s5842_s15  }
  0x26   : > { %p61_p9 = scmp.ne.s32.totalorder %s5834_s13, %s5830_s12  ;;  %p6706_p11 = scmp.eq.s32.totalorder %s5950_s23, 0 }
  0x27   : > { %p111_p12 = scmp.eq.s32.totalorder %s5950_s23, 3  ;;  %p117_p13 = scmp.eq.s32.totalorder %s4251_s24, 3 }
  0x28   : > { %p5959_p1 = por %p6706_p11, %p61_p9  ;;  %p4252_p2 = scmp.ge.s32.totalorder %s5842_s15, 1 }
  0x29   : > { %p5967_p3 = por %p111_p12, %p55_p0  ;;  %p5971_p4 = por %p117_p13, %p61_p9 }
  0x2a   : > { %s6712_s25 = scalar_select %p5959_p1, 1, 0 }
  0x2b   : > { %s6713_s26 = scalar_select %p5967_p3, 1, 0 }
  0x2c   : > { %s6714_s27 = scalar_select %p5971_p4, 1, 0 }
  0x2d   : > { %p124_p6 = scmp.lt.s32.totalorder %s5842_s15, 5  ;;  %s4258_s28 = sshll.u32 %s150_s21, 1 }
  0x2e   : > { %s5847_s5 = smov [#allocation2]   ;;  %s4817_s7 = sshll.u32 %s5842_s15, 5 }
  0x2f   : > { %p5978_p8 = pnand %p4252_p2, %p124_p6  ;;  %s137_s6 = sshll.u32 %s5847_s5, 4  ;;  %s5982_s6 = int_to_ptr.vmem [resolvable:$true] %s137_s6 }
  0x30   : > { %s5990_s10 = scalar_lea.hbm %s6704_s2, %s4817_s7  ;;  %s173_s21 = scalar_lea.vmem [#allocation7], %s4258_s28 }
  0x31   : > { %s6715_s4 = scalar_select %p5978_p8, 1, 0 }
  0x32   : > { %p4830_p0 = pneg %p5978_p8  ;;  %s181_s11 = sshll.u32 %s173_s21, 4  ;;  %s182_s11 = int_to_ptr.vmem [resolvable:$true] %s181_s11 }
  0x33   : > { %s5720_s18 = scalar_lea.hbm %s5990_s10, 32  ;;  %s5725_s24 = scalar_lea.hbm %s6704_s2, 128 }
  0x34   : > { %p5994_p10 = pnand %p4830_p0, %p6706_p11  ;;  %p5721_p9 = scmp.ne.s32.totalorder %s5990_s10, %s5720_s18 }
  0x35   : > { %p5726_p2 = scmp.lt.s32.totalorder %s5990_s10, %s6704_s2  ;;  %p5727_p6 = scmp.lt.s32.totalorder %s5725_s24, %s5720_s18 }
  0x36   : > { %s6716_s17 = scalar_select %p5994_p10, 1, 0 }
  0x37   : > { %p5723_p12 = pnand %p5721_p9, %p5694_p7  ;;  %p5728_p0 = por %p5727_p6, %p5726_p2 }
  0x39   : > { %p5724_p13 = pneg %p5723_p12 }
  0x3b   : > { %p5729_p11 = pnand %p5728_p0, %p5724_p13 }
  0x3d   : > { %5732 = shalt.err (!%p5729_p11)
}
  0x3e   : > { %s5733_s28 = scalar_lea.vmem %s182_s11, 32  ;;  %s5848_s8 = smov [#allocation7]  }
  0x3f   : > { %p5734_p4 = scmp.ne.s32.totalorder %s182_s11, %s5733_s28  ;;  %s5738_s9 = sshll.u32 %s5848_s8, 4  ;;  %s5739_s9 = int_to_ptr.vmem [resolvable:$false] %s5738_s9 }
  0x40   : > { %s5740_s21 = scalar_lea.vmem %s5739_s9, 64  ;;  %p5741_p12 = scmp.lt.s32.totalorder %s182_s11, %s5739_s9 }
  0x41   : > { %p5736_p3 = pnand %p5734_p4, %p5694_p7  ;;  %p5742_p1 = scmp.lt.s32.totalorder %s5740_s21, %s5733_s28 }
  0x43   : > { %p5737_p9 = pneg %p5736_p3  ;;  %p5743_p8 = por %p5742_p1, %p5741_p12 }
  0x45   : > { %p5744_p10 = pnand %p5743_p8, %p5737_p9 }
  0x47   : > { %5747 = shalt.err (!%p5744_p10)
}
  0x48   : > { %4840 = dma.hbm_to_vmem [thread:$0]  (!%p5916_p5), %s5990_s10, 32, %s182_s11, %s5922_s30  }
  0x49   : > { %p6717_p7 = scmp.ne.s32.totalorder %s6716_s17, 0  ;;  %s5759_s18 = scalar_lea.vmem %s5982_s6, 2048 }
  0x4a   : > { %p5760_p3 = scmp.ne.s32.totalorder %s5982_s6, %s5759_s18  ;;  %p5767_p2 = scmp.lt.s32.totalorder %s5982_s6, %s5982_s6 }
  0x4b   : > { %p5750_p11 = pneg %p6717_p7  ;;  %p5768_p1 = scmp.lt.s32.totalorder %s5759_s18, %s5759_s18 }
  0x4d   : > { %p5762_p4 = pnand %p5760_p3, %p5750_p11  ;;  %p5769_p8 = por %p5768_p1, %p5767_p2 }
  0x4f   : > { %p5763_p13 = pneg %p5762_p4 }
  0x51   : > { %p5770_p10 = pnand %p5769_p8, %p5763_p13 }
  0x53   : > { %5773 = shalt.err (!%p5770_p10)
}
  0x54   : > { %4833 = dma.hbm_to_vmem [thread:$0]  (!%p6717_p7), %s6702_s0, 2048, %s5982_s6, [#allocation3]  }
  0x55   : > { %p6718_p5 = scmp.ne.s32.totalorder %s6715_s4, 0 }
  0x56   : > { %p6719_p6 = scmp.eq.s32.totalorder (!%p6718_p5), %s5950_s23, 0 }
  0x57   : > { %190 = sbr.rel (%p6718_p5) target bundleno = 863 (0x35f), region = 32 }
  0x5c   : > { %5817 = dma.done.wait (%p6719_p6), [#allocation3], 2048   ;;  %p6720_p0 = pmov %p6719_p6 }
  0x5d   : > { %s196_s30 = sand.u32 1, %s5950_s23   ;;  %s6037_s10 = sand.u32 1, %s5834_s13  }
  0x5e   : > { %5819 = vsyncadd (%p6720_p0), [#allocation3], 4294965248  ;;  %s4263_s11 = sshll.u32 %s6037_s10, 12  ;;  %s197_s17 = scalar_lea.sflag [#allocation6], %s196_s30 }
  0x5f   : > { %s6040_s22 = scalar_lea.vmem [#allocation5], %s4263_s11  ;;  %p6721_p9 = scmp.ne.s32.totalorder %s6712_s25, 0 }
  0x61   : > { %5821 = dma.done.wait (%p6721_p9), %s197_s17, 65568  }
  0x62   : > { %5823 = vsyncadd (%p6721_p9), %s197_s17, 4294901728  ;;  %v4884_v0 = vld [vmem:[%s6040_s22 + $0x74] ss:$8 sps:$4 sm:$0xff]   ;;  %v4888_v2 = vld [vmem:[%s6040_s22 + $0x70] ss:$8 sps:$4 sm:$0xff]   ;;  %s4264_s25 = sshll.u32 %s6037_s10, 1 }
  0x63   : > { %v4886_v1 = vld [vmem:[%s6040_s22 + $0x174] ss:$8 sps:$4 sm:$0xff]   ;;  %3451 = vmatprep.subr.bf16.mxu0 %v4884_v0  ;;  %v4889_v3 = vld [vmem:[%s6040_s22 + $0x170] ss:$8 sps:$4 sm:$0xff]   ;;  %v4890_v4 = vld [vmem:[%s6040_s22 + $0x64] ss:$8 sps:$4 sm:$0xff]  }
  0x64   : > { %3492 = vmatprep.subr.bf16.mxu1 %v4886_v1  ;;  %3452 = vmatpush1.bf16.msra.mxu0 %v4888_v2  ;;  %v4892_v5 = vld [vmem:[%s6040_s22 + $0x164] ss:$8 sps:$4 sm:$0xff]   ;;  %v4894_v6 = vld [vmem:[%s6040_s22 + $0x60] ss:$8 sps:$4 sm:$0xff]   ;;  %v4896_v8 = vld [vmem:[%s6040_s22 + $0x54] ss:$8 sps:$4 sm:$0xff]  }
  0x65   : > { %3493 = vmatpush1.bf16.msra.mxu1 %v4889_v3  ;;  %3453 = vmatprep.subr.bf16.mxu0 %v4890_v4  ;;  %v4895_v7 = vld [vmem:[%s6040_s22 + $0x160] ss:$8 sps:$4 sm:$0xff]   ;;  %v4898_v9 = vld [vmem:[%s6040_s22 + $0x154] ss:$8 sps:$4 sm:$0xff]   ;;  %v4900_v10 = vld [vmem:[%s6040_s22 + $0x50] ss:$8 sps:$4 sm:$0xff]  }
  0x66   : > { %3494 = vmatprep.subr.bf16.mxu1 %v4892_v5  ;;  %v4901_v11 = vld [vmem:[%s6040_s22 + $0x150] ss:$8 sps:$4 sm:$0xff]   ;;  %v4902_v12 = vld [vmem:[%s6040_s22 + $0x44] ss:$8 sps:$4 sm:$0xff]   ;;  %v4906_v14 = vld [vmem:[%s6040_s22 + $0x40] ss:$8 sps:$4 sm:$0xff]  }
  0x67   : > { %v4904_v13 = vld [vmem:[%s6040_s22 + $0x144] ss:$8 sps:$4 sm:$0xff]   ;;  %v4907_v15 = vld [vmem:[%s6040_s22 + $0x140] ss:$8 sps:$4 sm:$0xff]   ;;  %v4908_v16 = vld [vmem:[%s6040_s22 + $0x34] ss:$8 sps:$4 sm:$0xff]  }
  0x68   : > { %3454 = vmatpush1.bf16.msra.mxu0 %v4894_v6  ;;  %v4910_v17 = vld [vmem:[%s6040_s22 + $0x134] ss:$8 sps:$4 sm:$0xff]   ;;  %v4912_v18 = vld [vmem:[%s6040_s22 + $0x30] ss:$8 sps:$4 sm:$0xff]   ;;  %v4914_v20 = vld [vmem:[%s6040_s22 + $0x24] ss:$8 sps:$4 sm:$0xff]  }
  0x69   : > { %3495 = vmatpush1.bf16.msra.mxu1 %v4895_v7  ;;  %3455 = vmatprep.subr.bf16.mxu0 %v4896_v8  ;;  %v4913_v19 = vld [vmem:[%s6040_s22 + $0x130] ss:$8 sps:$4 sm:$0xff]   ;;  %v4916_v21 = vld [vmem:[%s6040_s22 + $0x124] ss:$8 sps:$4 sm:$0xff]   ;;  %v4918_v22 = vld [vmem:[%s6040_s22 + $0x20] ss:$8 sps:$4 sm:$0xff]  }
  0x6a   : > { %3496 = vmatprep.subr.bf16.mxu1 %v4898_v9  ;;  %v4919_v23 = vld [vmem:[%s6040_s22 + $0x120] ss:$8 sps:$4 sm:$0xff]   ;;  %v4920_v24 = vld [vmem:[%s6040_s22 + $0x14] ss:$8 sps:$4 sm:$0xff]   ;;  %v4924_v26 = vld [vmem:[%s6040_s22 + $0x10] ss:$8 sps:$4 sm:$0xff]  }
  0x6b   : > { %v4922_v25 = vld [vmem:[%s6040_s22 + $0x114] ss:$8 sps:$4 sm:$0xff]   ;;  %v4925_v27 = vld [vmem:[%s6040_s22 + $0x110] ss:$8 sps:$4 sm:$0xff]   ;;  %v4926_v28 = vld [vmem:[%s6040_s22 + $0x4] ss:$8 sps:$4 sm:$0xff]  }
  0x6c   : > { %3456 = vmatpush1.bf16.msra.mxu0 %v4900_v10  ;;  %v4928_v29 = vld [vmem:[%s6040_s22 + $0x104] ss:$8 sps:$4 sm:$0xff]   ;;  %v4930_v30 = vld [vmem:[%s6040_s22] ss:$8 sps:$4 sm:$0xff]   ;;  %v4932_v32 = vld [vmem:[%s6040_s22 + $0xf4] ss:$8 sps:$4 sm:$0xff]  }
  0x6d   : > { %3497 = vmatpush1.bf16.msra.mxu1 %v4901_v11  ;;  %3457 = vmatprep.subr.bf16.mxu0 %v4902_v12  ;;  %v4931_v31 = vld [vmem:[%s6040_s22 + $0x100] ss:$8 sps:$4 sm:$0xff]   ;;  %v4934_v33 = vld [vmem:[%s6040_s22 + $0x1f4] ss:$8 sps:$4 sm:$0xff]   ;;  %v4936_v34 = vld [vmem:[%s6040_s22 + $0xf0] ss:$8 sps:$4 sm:$0xff]  }
  0x6e   : > { %3498 = vmatprep.subr.bf16.mxu1 %v4904_v13  ;;  %v4937_v35 = vld [vmem:[%s6040_s22 + $0x1f0] ss:$8 sps:$4 sm:$0xff]   ;;  %v4938_v36 = vld [vmem:[%s6040_s22 + $0xe4] ss:$8 sps:$4 sm:$0xff]   ;;  %v4942_v38 = vld [vmem:[%s6040_s22 + $0xe0] ss:$8 sps:$4 sm:$0xff]  }
  0x6f   : > { %v4940_v37 = vld [vmem:[%s6040_s22 + $0x1e4] ss:$8 sps:$4 sm:$0xff]   ;;  %v4943_v39 = vld [vmem:[%s6040_s22 + $0x1e0] ss:$8 sps:$4 sm:$0xff]   ;;  %v4944_v40 = vld [vmem:[%s6040_s22 + $0xd4] ss:$8 sps:$4 sm:$0xff]  }
  0x70   : > { %3458 = vmatpush1.bf16.msra.mxu0 %v4906_v14  ;;  %v4946_v41 = vld [vmem:[%s6040_s22 + $0x1d4] ss:$8 sps:$4 sm:$0xff]   ;;  %v4948_v42 = vld [vmem:[%s6040_s22 + $0xd0] ss:$8 sps:$4 sm:$0xff]   ;;  %v4950_v44 = vld [vmem:[%s6040_s22 + $0xc4] ss:$8 sps:$4 sm:$0xff]  }
  0x71   : > { %3499 = vmatpush1.bf16.msra.mxu1 %v4907_v15  ;;  %3459 = vmatprep.subr.bf16.mxu0 %v4908_v16  ;;  %v4949_v43 = vld [vmem:[%s6040_s22 + $0x1d0] ss:$8 sps:$4 sm:$0xff]   ;;  %v4952_v45 = vld [vmem:[%s6040_s22 + $0x1c4] ss:$8 sps:$4 sm:$0xff]   ;;  %v4954_v49 = vld [vmem:[%s6040_s22 + $0xc0] ss:$8 sps:$4 sm:$0xff]  }
  0x72   : > { %3500 = vmatprep.subr.bf16.mxu1 %v4910_v17  ;;  %v239_v46 = vld [vmem:[#allocation2] sm:$0xff]  ;;  %v240_v48 = vld [vmem:[#allocation2 + $0x8] sm:$0xff]  ;;  %v4956_v52 = vld [vmem:[%s6040_s22 + $0xb4] ss:$8 sps:$4 sm:$0xff]   ;;  %s209_s4 = scalar_lea.vmem [#allocation7], %s4264_s25  ;;  %s4265_s6 = sshll.u32 %s6037_s10, 3 }
  0x73   : > { %v4267_v47 = vcombine.high %v239_v46, %v239_v46  ;;  %v4955_v50 = vld [vmem:[%s6040_s22 + $0x1c0] ss:$8 sps:$4 sm:$0xff]   ;;  %v4269_v51 = vcombine.high %v240_v48, %v240_v48  ;;  %v4958_v53 = vld [vmem:[%s6040_s22 + $0x1b4] ss:$8 sps:$4 sm:$0xff]   ;;  %v4960_v54 = vld [vmem:[%s6040_s22 + $0xb0] ss:$8 sps:$4 sm:$0xff]   ;;  %v4266_v6 = vcombine.low %v239_v46, %v239_v46  ;;  %v4268_v7 = vcombine.low %v240_v48, %v240_v48 }
  0x74   : > { %3460 = vmatpush1.bf16.msra.mxu0 %v4912_v18  ;;  %v4961_v55 = vld [vmem:[%s6040_s22 + $0x1b0] ss:$8 sps:$4 sm:$0xff]   ;;  %v4962_v56 = vld [vmem:[%s6040_s22 + $0xa4] ss:$8 sps:$4 sm:$0xff]   ;;  %v4966_v58 = vld [vmem:[%s6040_s22 + $0xa0] ss:$8 sps:$4 sm:$0xff]  }
  0x75   : > { %3501 = vmatpush1.bf16.msra.mxu1 %v4913_v19  ;;  %3461 = vmatprep.subr.bf16.mxu0 %v4914_v20  ;;  %v4964_v57 = vld [vmem:[%s6040_s22 + $0x1a4] ss:$8 sps:$4 sm:$0xff]   ;;  %v4967_v59 = vld [vmem:[%s6040_s22 + $0x1a0] ss:$8 sps:$4 sm:$0xff]   ;;  %v4968_v60 = vld [vmem:[%s6040_s22 + $0x94] ss:$8 sps:$4 sm:$0xff]  }
  0x76   : > { %3502 = vmatprep.subr.bf16.mxu1 %v4916_v21  ;;  %3483 = vmatprep.mubr.bf16.mxu0 %v4267_v47  ;;  %v4970_v61 = vld [vmem:[%s6040_s22 + $0x194] ss:$8 sps:$4 sm:$0xff]   ;;  %v4972_v62 = vld [vmem:[%s6040_s22 + $0x90] ss:$8 sps:$4 sm:$0xff]   ;;  %v4974_v0 = vld [vmem:[%s6040_s22 + $0x84] ss:$8 sps:$4 sm:$0xff]  }
  0x77   : > { %3524 = vmatprep.mubr.bf16.mxu1 %v4269_v51  ;;  %v4973_v63 = vld [vmem:[%s6040_s22 + $0x190] ss:$8 sps:$4 sm:$0xff]   ;;  %v4976_v1 = vld [vmem:[%s6040_s22 + $0x184] ss:$8 sps:$4 sm:$0xff]   ;;  %v4978_v2 = vld [vmem:[%s6040_s22 + $0x80] ss:$8 sps:$4 sm:$0xff]  }
  0x78   : > { %3462 = vmatpush1.bf16.msra.mxu0 %v4918_v22  ;;  %v4979_v3 = vld [vmem:[%s6040_s22 + $0x180] ss:$8 sps:$4 sm:$0xff]   ;;  %v4986_v4 = vld [vmem:[%s6040_s22 + $0x274] ss:$8 sps:$4 sm:$0xff]   ;;  %v4984_v8 = vld [vmem:[%s6040_s22 + $0x270] ss:$8 sps:$4 sm:$0xff]  }
  0x79   : > { %3503 = vmatpush1.bf16.msra.mxu1 %v4919_v23  ;;  %3463 = vmatprep.subr.bf16.mxu0 %v4920_v24  ;;  %v4989_v5 = vld [vmem:[%s6040_s22 + $0x374] ss:$8 sps:$4 sm:$0xff]   ;;  %v4987_v9 = vld [vmem:[%s6040_s22 + $0x370] ss:$8 sps:$4 sm:$0xff]   ;;  %v4992_v10 = vld [vmem:[%s6040_s22 + $0x264] ss:$8 sps:$4 sm:$0xff]  }
  0x7a   : > { %3504 = vmatprep.subr.bf16.mxu1 %v4922_v25  ;;  %v4995_v11 = vld [vmem:[%s6040_s22 + $0x364] ss:$8 sps:$4 sm:$0xff]   ;;  %v4990_v12 = vld [vmem:[%s6040_s22 + $0x260] ss:$8 sps:$4 sm:$0xff]   ;;  %v4998_v14 = vld [vmem:[%s6040_s22 + $0x254] ss:$8 sps:$4 sm:$0xff]  }
  0x7b   : > { %v4993_v13 = vld [vmem:[%s6040_s22 + $0x360] ss:$8 sps:$4 sm:$0xff]   ;;  %v5001_v15 = vld [vmem:[%s6040_s22 + $0x354] ss:$8 sps:$4 sm:$0xff]   ;;  %v4996_v16 = vld [vmem:[%s6040_s22 + $0x250] ss:$8 sps:$4 sm:$0xff]  }
  0x7c   : > { %3464 = vmatpush1.bf16.msra.mxu0 %v4924_v26  ;;  %v4999_v17 = vld [vmem:[%s6040_s22 + $0x350] ss:$8 sps:$4 sm:$0xff]   ;;  %v5004_v18 = vld [vmem:[%s6040_s22 + $0x244] ss:$8 sps:$4 sm:$0xff]   ;;  %v5002_v20 = vld [vmem:[%s6040_s22 + $0x240] ss:$8 sps:$4 sm:$0xff]  }
  0x7d   : > { %3505 = vmatpush1.bf16.msra.mxu1 %v4925_v27  ;;  %3465 = vmatprep.subr.bf16.mxu0 %v4926_v28  ;;  %v5007_v19 = vld [vmem:[%s6040_s22 + $0x344] ss:$8 sps:$4 sm:$0xff]   ;;  %v5005_v21 = vld [vmem:[%s6040_s22 + $0x340] ss:$8 sps:$4 sm:$0xff]   ;;  %v5010_v22 = vld [vmem:[%s6040_s22 + $0x234] ss:$8 sps:$4 sm:$0xff]  }
  0x7e   : > { %3506 = vmatprep.subr.bf16.mxu1 %v4928_v29  ;;  %v5013_v23 = vld [vmem:[%s6040_s22 + $0x334] ss:$8 sps:$4 sm:$0xff]   ;;  %v5008_v24 = vld [vmem:[%s6040_s22 + $0x230] ss:$8 sps:$4 sm:$0xff]   ;;  %v5016_v26 = vld [vmem:[%s6040_s22 + $0x224] ss:$8 sps:$4 sm:$0xff]  }
  0x7f   : > { %v5011_v25 = vld [vmem:[%s6040_s22 + $0x330] ss:$8 sps:$4 sm:$0xff]   ;;  %v5019_v27 = vld [vmem:[%s6040_s22 + $0x324] ss:$8 sps:$4 sm:$0xff]   ;;  %v5014_v28 = vld [vmem:[%s6040_s22 + $0x220] ss:$8 sps:$4 sm:$0xff]  }
  0x80   : > { %3466 = vmatpush1.bf16.msra.mxu0 %v4930_v30  ;;  %v5017_v29 = vld [vmem:[%s6040_s22 + $0x320] ss:$8 sps:$4 sm:$0xff]   ;;  %v5022_v30 = vld [vmem:[%s6040_s22 + $0x214] ss:$8 sps:$4 sm:$0xff]   ;;  %v5040_v46 = vld [vmem:[%s6040_s22 + $0x2e4] ss:$8 sps:$4 sm:$0xff]  }
  0x81   : > { %3507 = vmatpush1.bf16.msra.mxu1 %v4931_v31  ;;  %3467 = vmatprep.subr.bf16.mxu0 %v4932_v32  ;;  %v5025_v31 = vld [vmem:[%s6040_s22 + $0x314] ss:$8 sps:$4 sm:$0xff]   ;;  %v5043_v47 = vld [vmem:[%s6040_s22 + $0x3e4] ss:$8 sps:$4 sm:$0xff]   ;;  %v5038_v48 = vld [vmem:[%s6040_s22 + $0x2e0] ss:$8 sps:$4 sm:$0xff]  }
  0x82   : > { %3508 = vmatprep.subr.bf16.mxu1 %v4934_v33  ;;  %v6136_v32 = vld [vmem:[#allocation2 + $0x10] sm:$0xff]  ;;  %v6138_v33 = vld [vmem:[#allocation2 + $0x18] sm:$0xff]  ;;  %s4819_s24 = sshll.u32 %s5950_s23, 7  ;;  %s236_s5 = scalar_lea.vmem [#allocation8], %s4265_s6 }
  0x83   : > { %v5049_v51 = vld [vmem:[%s6040_s22 + $0x3d4] ss:$8 sps:$4 sm:$0xff]   ;;  %s4149_s7 = sshll.u32 %s236_s5, 4  ;;  %s4147_s9 = scalar_lea.hbm %s6705_s3, %s4819_s24  ;;  %s4150_s7 = int_to_ptr.vmem [resolvable:$true] %s4149_s7 }
  0x84   : > { %3468 = vmatpush2.bf16.msra.mxu0 %v4936_v34  ;;  %v5020_v34 = vld [vmem:[%s6040_s22 + $0x210] ss:$8 sps:$4 sm:$0xff]   ;;  %s4135_s21 = scalar_lea.sflag [#allocation4], %s6037_s10  ;;  %s5774_s18 = scalar_lea.vmem %s4150_s7, 128 }
  0x85   : > { %3509 = vmatpush2.bf16.msra.mxu1 %v4937_v35  ;;  %3469 = vmatprep.subr.bf16.mxu0 %v4938_v36  ;;  %v5023_v35 = vld [vmem:[%s6040_s22 + $0x310] ss:$8 sps:$4 sm:$0xff]   ;;  %v4271_v36 = vcombine.high %v6136_v32, %v6136_v32  ;;  %p5775_p12 = scmp.ne.s32.totalorder %s4150_s7, %s5774_s18  ;;  %p6722_p7 = scmp.ne.s32.totalorder %s6713_s26, 0 }
  0x86   : > { %3510 = vmatprep.subr.bf16.mxu1 %v4940_v37  ;;  %v4273_v37 = vcombine.high %v6138_v33, %v6138_v33  ;;  %s5849_s29 = smov [#allocation8]  }
  0x87   : > { %p5776_p11 = pnand %p5775_p12, %p6722_p7  ;;  %s5778_s20 = sshll.u32 %s5849_s29, 4  ;;  %s5779_s20 = int_to_ptr.vmem [resolvable:$false] %s5778_s20 }
  0x88   : > { %3470 = vmatpush2.bf16.msra.mxu0 %v4942_v38  ;;  %v5028_v38 = vld [vmem:[%s6040_s22 + $0x204] ss:$8 sps:$4 sm:$0xff]   ;;  %s5780_s23 = scalar_lea.vmem %s5779_s20, 256  ;;  %p5781_p4 = scmp.lt.s32.totalorder %s4150_s7, %s5779_s20 }
  0x89   : > { %3511 = vmatpush2.bf16.msra.mxu1 %v4943_v39  ;;  %3471 = vmatprep.subr.bf16.mxu0 %v4944_v40  ;;  %v5031_v39 = vld [vmem:[%s6040_s22 + $0x304] ss:$8 sps:$4 sm:$0xff]   ;;  %v5026_v40 = vld [vmem:[%s6040_s22 + $0x200] ss:$8 sps:$4 sm:$0xff]   ;;  %p5777_p3 = pneg %p5776_p11  ;;  %p5782_p13 = scmp.lt.s32.totalorder %s5780_s23, %s5774_s18 }
  0x8a   : > { %3512 = vmatprep.subr.bf16.mxu1 %v4946_v41  ;;  %v5029_v41 = vld [vmem:[%s6040_s22 + $0x300] ss:$8 sps:$4 sm:$0xff]  }
  0x8b   : > { %p5783_p2 = por %p5782_p13, %p5781_p4 }
  0x8c   : > { %3472 = vmatpush2.bf16.msra.mxu0 %v4948_v42  ;;  %v5034_v42 = vld [vmem:[%s6040_s22 + $0x2f4] ss:$8 sps:$4 sm:$0xff]  }
  0x8d   : > { %3513 = vmatpush2.bf16.msra.mxu1 %v4949_v43  ;;  %3473 = vmatprep.subr.bf16.mxu0 %v4950_v44  ;;  %v5037_v43 = vld [vmem:[%s6040_s22 + $0x3f4] ss:$8 sps:$4 sm:$0xff]   ;;  %v5032_v44 = vld [vmem:[%s6040_s22 + $0x2f0] ss:$8 sps:$4 sm:$0xff]   ;;  %p5784_p1 = pnand %p5783_p2, %p5777_p3 }
  0x8e   : > { %3514 = vmatprep.subr.bf16.mxu1 %v4952_v45  ;;  %v5035_v45 = vld [vmem:[%s6040_s22 + $0x3f0] ss:$8 sps:$4 sm:$0xff]  }
  0x90   : > { %3474 = vmatpush2.bf16.msra.mxu0 %v4954_v49  ;;  %v5041_v49 = vld [vmem:[%s6040_s22 + $0x3e0] ss:$8 sps:$4 sm:$0xff]  }
  0x91   : > { %3515 = vmatpush2.bf16.msra.mxu1 %v4955_v50  ;;  %3475 = vmatprep.subr.bf16.mxu0 %v4956_v52  ;;  %v5046_v50 = vld [vmem:[%s6040_s22 + $0x2d4] ss:$8 sps:$4 sm:$0xff]   ;;  %v5044_v52 = vld [vmem:[%s6040_s22 + $0x2d0] ss:$8 sps:$4 sm:$0xff]  }
  0x92   : > { %3516 = vmatprep.subr.bf16.mxu1 %v4958_v53  ;;  %v5047_v53 = vld [vmem:[%s6040_s22 + $0x3d0] ss:$8 sps:$4 sm:$0xff]  }
  0x94   : > { %3476 = vmatpush2.bf16.msra.mxu0 %v4960_v54  ;;  %v5052_v54 = vld [vmem:[%s6040_s22 + $0x2c4] ss:$8 sps:$4 sm:$0xff]  }
  0x95   : > { %3517 = vmatpush2.bf16.msra.mxu1 %v4961_v55  ;;  %3477 = vmatprep.subr.bf16.mxu0 %v4962_v56  ;;  %v5055_v55 = vld [vmem:[%s6040_s22 + $0x3c4] ss:$8 sps:$4 sm:$0xff]   ;;  %v5050_v56 = vld [vmem:[%s6040_s22 + $0x2c0] ss:$8 sps:$4 sm:$0xff]  }
  0x96   : > { %3518 = vmatprep.subr.bf16.mxu1 %v4964_v57  ;;  %v5053_v57 = vld [vmem:[%s6040_s22 + $0x3c0] ss:$8 sps:$4 sm:$0xff]  }
  0x98   : > { %3478 = vmatpush2.bf16.msra.mxu0 %v4966_v58  ;;  %v5058_v58 = vld [vmem:[%s6040_s22 + $0x2b4] ss:$8 sps:$4 sm:$0xff]  }
  0x99   : > { %3519 = vmatpush2.bf16.msra.mxu1 %v4967_v59  ;;  %3479 = vmatprep.subr.bf16.mxu0 %v4968_v60  ;;  %v5061_v59 = vld [vmem:[%s6040_s22 + $0x3b4] ss:$8 sps:$4 sm:$0xff]   ;;  %v5056_v60 = vld [vmem:[%s6040_s22 + $0x2b0] ss:$8 sps:$4 sm:$0xff]  }
  0x9a   : > { %3520 = vmatprep.subr.bf16.mxu1 %v4970_v61  ;;  %v5059_v61 = vld [vmem:[%s6040_s22 + $0x3b0] ss:$8 sps:$4 sm:$0xff]  }
  0x9c   : > { %3480 = vmatpush2.bf16.msra.mxu0 %v4972_v62  ;;  %v5064_v62 = vld [vmem:[%s6040_s22 + $0x2a4] ss:$8 sps:$4 sm:$0xff]  }
  0x9d   : > { %3521 = vmatpush2.bf16.msra.mxu1 %v4973_v63  ;;  %3481 = vmatprep.subr.bf16.mxu0 %v4974_v0  ;;  %v5067_v63 = vld [vmem:[%s6040_s22 + $0x3a4] ss:$8 sps:$4 sm:$0xff]   ;;  %v5062_v0 = vld [vmem:[%s6040_s22 + $0x2a0] ss:$8 sps:$4 sm:$0xff]  }
  0x9e   : > { %3522 = vmatprep.subr.bf16.mxu1 %v4976_v1  ;;  %v5065_v1 = vld [vmem:[%s6040_s22 + $0x3a0] ss:$8 sps:$4 sm:$0xff]  }
  0xa0   : > { %3482 = vmatpush2.bf16.msra.mxu0 %v4978_v2  ;;  %v5070_v2 = vld [vmem:[%s6040_s22 + $0x294] ss:$8 sps:$4 sm:$0xff]  }
  0xa1   : > { %3523 = vmatpush2.bf16.msra.mxu1 %v4979_v3  ;;  %3533 = vmatprep.subr.bf16.mxu0 %v4986_v4  ;;  %v5073_v3 = vld [vmem:[%s6040_s22 + $0x394] ss:$8 sps:$4 sm:$0xff]   ;;  %v5068_v4 = vld [vmem:[%s6040_s22 + $0x290] ss:$8 sps:$4 sm:$0xff]  }
  0xa2   : > { %3574 = vmatprep.subr.bf16.mxu1 %v4989_v5  ;;  %v5071_v5 = vld [vmem:[%s6040_s22 + $0x390] ss:$8 sps:$4 sm:$0xff]  }
  0xa3   : > { %3484 = vmatmul.mubr.bf16.vlgmr.msra.gmra.mxu0 %v4266_v6  ;;  %v5076_v6 = vld [vmem:[%s6040_s22 + $0x284] ss:$8 sps:$4 sm:$0xff]  }
  0xa4   : > { %3525 = vmatmul.mubr.bf16.vlgmr.msra.gmra.mxu1 %v4268_v7  ;;  %3534 = vmatpush1.bf16.msra.mxu0 %v4984_v8  ;;  %v5079_v7 = vld [vmem:[%s6040_s22 + $0x384] ss:$8 sps:$4 sm:$0xff]   ;;  %v5074_v8 = vld [vmem:[%s6040_s22 + $0x280] ss:$8 sps:$4 sm:$0xff]  }
  0xa5   : > { %3575 = vmatpush1.bf16.msra.mxu1 %v4987_v9  ;;  %3535 = vmatprep.subr.bf16.mxu0 %v4992_v10  ;;  %v5077_v9 = vld [vmem:[%s6040_s22 + $0x380] ss:$8 sps:$4 sm:$0xff]   ;;  %v5086_v10 = vld [vmem:[%s6040_s22 + $0x474] ss:$8 sps:$4 sm:$0xff]  }
  0xa6   : > { %3576 = vmatprep.subr.bf16.mxu1 %v4995_v11  ;;  %3565 = vmatprep.mubr.bf16.mxu0 %v4271_v36  ;;  %v5089_v11 = vld [vmem:[%s6040_s22 + $0x574] ss:$8 sps:$4 sm:$0xff]   ;;  %v5116_v36 = vld [vmem:[%s6040_s22 + $0x424] ss:$8 sps:$4 sm:$0xff]  }
  0xa7   : > { %3606 = vmatprep.mubr.bf16.mxu1 %v4273_v37  ;;  %v5119_v37 = vld [vmem:[%s6040_s22 + $0x524] ss:$8 sps:$4 sm:$0xff]  }
  0xa8   : > { %3536 = vmatpush1.bf16.msra.mxu0 %v4990_v12  ;;  %v4270_v12 = vcombine.low %v6136_v32, %v6136_v32  ;;  %v5110_v32 = vld [vmem:[%s6040_s22 + $0x434] ss:$8 sps:$4 sm:$0xff]  }
  0xa9   : > { %3577 = vmatpush1.bf16.msra.mxu1 %v4993_v13  ;;  %3537 = vmatprep.subr.bf16.mxu0 %v4998_v14  ;;  %v4272_v13 = vcombine.low %v6138_v33, %v6138_v33  ;;  %v5084_v14 = vld [vmem:[%s6040_s22 + $0x470] ss:$8 sps:$4 sm:$0xff]   ;;  %v5113_v33 = vld [vmem:[%s6040_s22 + $0x534] ss:$8 sps:$4 sm:$0xff]  }
  0xaa   : > { %3578 = vmatprep.subr.bf16.mxu1 %v5001_v15  ;;  %v5087_v15 = vld [vmem:[%s6040_s22 + $0x570] ss:$8 sps:$4 sm:$0xff]  }
  0xac   : > { %3538 = vmatpush1.bf16.msra.mxu0 %v4996_v16  ;;  %v5092_v16 = vld [vmem:[%s6040_s22 + $0x464] ss:$8 sps:$4 sm:$0xff]  }
  0xad   : > { %3579 = vmatpush1.bf16.msra.mxu1 %v4999_v17  ;;  %3539 = vmatprep.subr.bf16.mxu0 %v5004_v18  ;;  %v5095_v17 = vld [vmem:[%s6040_s22 + $0x564] ss:$8 sps:$4 sm:$0xff]  }
  0xae   : > { %3580 = vmatprep.subr.bf16.mxu1 %v5007_v19  ;;  %v6192_v18 = vld [vmem:[#allocation2 + $0x20] sm:$0xff]  ;;  %v6194_v19 = vld [vmem:[#allocation2 + $0x28] sm:$0xff] }
  0xb0   : > { %3540 = vmatpush1.bf16.msra.mxu0 %v5002_v20  ;;  %v4275_v20 = vcombine.high %v6192_v18, %v6192_v18 }
  0xb1   : > { %3581 = vmatpush1.bf16.msra.mxu1 %v5005_v21  ;;  %3541 = vmatprep.subr.bf16.mxu0 %v5010_v22  ;;  %v4277_v21 = vcombine.high %v6194_v19, %v6194_v19  ;;  %v5090_v22 = vld [vmem:[%s6040_s22 + $0x460] ss:$8 sps:$4 sm:$0xff]  }
  0xb2   : > { %3582 = vmatprep.subr.bf16.mxu1 %v5013_v23  ;;  %v5093_v23 = vld [vmem:[%s6040_s22 + $0x560] ss:$8 sps:$4 sm:$0xff]  }
  0xb4   : > { %3542 = vmatpush1.bf16.msra.mxu0 %v5008_v24  ;;  %v5098_v24 = vld [vmem:[%s6040_s22 + $0x454] ss:$8 sps:$4 sm:$0xff]  }
  0xb5   : > { %3583 = vmatpush1.bf16.msra.mxu1 %v5011_v25  ;;  %3543 = vmatprep.subr.bf16.mxu0 %v5016_v26  ;;  %v5101_v25 = vld [vmem:[%s6040_s22 + $0x554] ss:$8 sps:$4 sm:$0xff]   ;;  %v5096_v26 = vld [vmem:[%s6040_s22 + $0x450] ss:$8 sps:$4 sm:$0xff]  }
  0xb6   : > { %3584 = vmatprep.subr.bf16.mxu1 %v5019_v27  ;;  %v5099_v27 = vld [vmem:[%s6040_s22 + $0x550] ss:$8 sps:$4 sm:$0xff]  }
  0xb8   : > { %3544 = vmatpush1.bf16.msra.mxu0 %v5014_v28  ;;  %v5104_v28 = vld [vmem:[%s6040_s22 + $0x444] ss:$8 sps:$4 sm:$0xff]  }
  0xb9   : > { %3585 = vmatpush1.bf16.msra.mxu1 %v5017_v29  ;;  %3545 = vmatprep.subr.bf16.mxu0 %v5022_v30  ;;  %v5107_v29 = vld [vmem:[%s6040_s22 + $0x544] ss:$8 sps:$4 sm:$0xff]   ;;  %v5102_v30 = vld [vmem:[%s6040_s22 + $0x440] ss:$8 sps:$4 sm:$0xff]  }
  0xba   : > { %3586 = vmatprep.subr.bf16.mxu1 %v5025_v31  ;;  %v5105_v31 = vld [vmem:[%s6040_s22 + $0x540] ss:$8 sps:$4 sm:$0xff]  }
  0xbc   : > { %3546 = vmatpush1.bf16.msra.mxu0 %v5020_v34  ;;  %v5108_v34 = vld [vmem:[%s6040_s22 + $0x430] ss:$8 sps:$4 sm:$0xff]  }
  0xbd   : > { %3587 = vmatpush1.bf16.msra.mxu1 %v5023_v35  ;;  %3547 = vmatprep.subr.bf16.mxu0 %v5028_v38  ;;  %v5111_v35 = vld [vmem:[%s6040_s22 + $0x530] ss:$8 sps:$4 sm:$0xff]   ;;  %v5114_v38 = vld [vmem:[%s6040_s22 + $0x420] ss:$8 sps:$4 sm:$0xff]  }
  0xbe   : > { %3588 = vmatprep.subr.bf16.mxu1 %v5031_v39  ;;  %v5117_v39 = vld [vmem:[%s6040_s22 + $0x520] ss:$8 sps:$4 sm:$0xff]  }
  0xc0   : > { %3548 = vmatpush1.bf16.msra.mxu0 %v5026_v40  ;;  %v5122_v40 = vld [vmem:[%s6040_s22 + $0x414] ss:$8 sps:$4 sm:$0xff]  }
  0xc1   : > { %3589 = vmatpush1.bf16.msra.mxu1 %v5029_v41  ;;  %3549 = vmatprep.subr.bf16.mxu0 %v5034_v42  ;;  %v5125_v41 = vld [vmem:[%s6040_s22 + $0x514] ss:$8 sps:$4 sm:$0xff]   ;;  %v5120_v42 = vld [vmem:[%s6040_s22 + $0x410] ss:$8 sps:$4 sm:$0xff]  }
  0xc2   : > { %3590 = vmatprep.subr.bf16.mxu1 %v5037_v43  ;;  %v5123_v43 = vld [vmem:[%s6040_s22 + $0x510] ss:$8 sps:$4 sm:$0xff]  }
  0xc4   : > { %3550 = vmatpush2.bf16.msra.mxu0 %v5032_v44  ;;  %v5128_v44 = vld [vmem:[%s6040_s22 + $0x404] ss:$8 sps:$4 sm:$0xff]  }
  0xc5   : > { %3591 = vmatpush2.bf16.msra.mxu1 %v5035_v45  ;;  %3551 = vmatprep.subr.bf16.mxu0 %v5040_v46  ;;  %v5131_v45 = vld [vmem:[%s6040_s22 + $0x504] ss:$8 sps:$4 sm:$0xff]   ;;  %v5126_v46 = vld [vmem:[%s6040_s22 + $0x400] ss:$8 sps:$4 sm:$0xff]  }
  0xc6   : > { %3592 = vmatprep.subr.bf16.mxu1 %v5043_v47  ;;  %v5129_v47 = vld [vmem:[%s6040_s22 + $0x500] ss:$8 sps:$4 sm:$0xff]  }
  0xc8   : > { %3552 = vmatpush2.bf16.msra.mxu0 %v5038_v48  ;;  %v5134_v48 = vld [vmem:[%s6040_s22 + $0x4f4] ss:$8 sps:$4 sm:$0xff]  }
  0xc9   : > { %3593 = vmatpush2.bf16.msra.mxu1 %v5041_v49  ;;  %3553 = vmatprep.subr.bf16.mxu0 %v5046_v50  ;;  %v5137_v49 = vld [vmem:[%s6040_s22 + $0x5f4] ss:$8 sps:$4 sm:$0xff]   ;;  %v5132_v50 = vld [vmem:[%s6040_s22 + $0x4f0] ss:$8 sps:$4 sm:$0xff]  }
  0xca   : > { %3594 = vmatprep.subr.bf16.mxu1 %v5049_v51  ;;  %v5135_v51 = vld [vmem:[%s6040_s22 + $0x5f0] ss:$8 sps:$4 sm:$0xff]  }
  0xcc   : > { %3554 = vmatpush2.bf16.msra.mxu0 %v5044_v52  ;;  %v5140_v52 = vld [vmem:[%s6040_s22 + $0x4e4] ss:$8 sps:$4 sm:$0xff]  }
  0xcd   : > { %3595 = vmatpush2.bf16.msra.mxu1 %v5047_v53  ;;  %3555 = vmatprep.subr.bf16.mxu0 %v5052_v54  ;;  %v5143_v53 = vld [vmem:[%s6040_s22 + $0x5e4] ss:$8 sps:$4 sm:$0xff]   ;;  %v5138_v54 = vld [vmem:[%s6040_s22 + $0x4e0] ss:$8 sps:$4 sm:$0xff]  }
  0xce   : > { %3596 = vmatprep.subr.bf16.mxu1 %v5055_v55  ;;  %v5141_v55 = vld [vmem:[%s6040_s22 + $0x5e0] ss:$8 sps:$4 sm:$0xff]  }
  0xd0   : > { %3556 = vmatpush2.bf16.msra.mxu0 %v5050_v56  ;;  %v5146_v56 = vld [vmem:[%s6040_s22 + $0x4d4] ss:$8 sps:$4 sm:$0xff]  }
  0xd1   : > { %3597 = vmatpush2.bf16.msra.mxu1 %v5053_v57  ;;  %3557 = vmatprep.subr.bf16.mxu0 %v5058_v58  ;;  %v5149_v57 = vld [vmem:[%s6040_s22 + $0x5d4] ss:$8 sps:$4 sm:$0xff]   ;;  %v5144_v58 = vld [vmem:[%s6040_s22 + $0x4d0] ss:$8 sps:$4 sm:$0xff]  }
  0xd2   : > { %3598 = vmatprep.subr.bf16.mxu1 %v5061_v59  ;;  %v5147_v59 = vld [vmem:[%s6040_s22 + $0x5d0] ss:$8 sps:$4 sm:$0xff]  }
  0xd4   : > { %3558 = vmatpush2.bf16.msra.mxu0 %v5056_v60  ;;  %v5152_v60 = vld [vmem:[%s6040_s22 + $0x4c4] ss:$8 sps:$4 sm:$0xff]  }
  0xd5   : > { %3599 = vmatpush2.bf16.msra.mxu1 %v5059_v61  ;;  %3559 = vmatprep.subr.bf16.mxu0 %v5064_v62  ;;  %v5155_v61 = vld [vmem:[%s6040_s22 + $0x5c4] ss:$8 sps:$4 sm:$0xff]   ;;  %v5150_v62 = vld [vmem:[%s6040_s22 + $0x4c0] ss:$8 sps:$4 sm:$0xff]  }
  0xd6   : > { %3600 = vmatprep.subr.bf16.mxu1 %v5067_v63  ;;  %v5153_v63 = vld [vmem:[%s6040_s22 + $0x5c0] ss:$8 sps:$4 sm:$0xff]  }
  0xd8   : > { %3560 = vmatpush2.bf16.msra.mxu0 %v5062_v0  ;;  %v5158_v0 = vld [vmem:[%s6040_s22 + $0x4b4] ss:$8 sps:$4 sm:$0xff]  }
  0xd9   : > { %3601 = vmatpush2.bf16.msra.mxu1 %v5065_v1  ;;  %3561 = vmatprep.subr.bf16.mxu0 %v5070_v2  ;;  %v5161_v1 = vld [vmem:[%s6040_s22 + $0x5b4] ss:$8 sps:$4 sm:$0xff]   ;;  %v5156_v2 = vld [vmem:[%s6040_s22 + $0x4b0] ss:$8 sps:$4 sm:$0xff]  }
  0xda   : > { %3602 = vmatprep.subr.bf16.mxu1 %v5073_v3  ;;  %v5159_v3 = vld [vmem:[%s6040_s22 + $0x5b0] ss:$8 sps:$4 sm:$0xff]  }
  0xdc   : > { %3562 = vmatpush2.bf16.msra.mxu0 %v5068_v4  ;;  %v5164_v4 = vld [vmem:[%s6040_s22 + $0x4a4] ss:$8 sps:$4 sm:$0xff]  }
  0xdd   : > { %3603 = vmatpush2.bf16.msra.mxu1 %v5071_v5  ;;  %3563 = vmatprep.subr.bf16.mxu0 %v5076_v6  ;;  %v5167_v5 = vld [vmem:[%s6040_s22 + $0x5a4] ss:$8 sps:$4 sm:$0xff]   ;;  %v5162_v6 = vld [vmem:[%s6040_s22 + $0x4a0] ss:$8 sps:$4 sm:$0xff]  }
  0xde   : > { %3604 = vmatprep.subr.bf16.mxu1 %v5079_v7  ;;  %v5165_v7 = vld [vmem:[%s6040_s22 + $0x5a0] ss:$8 sps:$4 sm:$0xff]  }
  0xe0   : > { %3564 = vmatpush2.bf16.msra.mxu0 %v5074_v8  ;;  %v5170_v8 = vld [vmem:[%s6040_s22 + $0x494] ss:$8 sps:$4 sm:$0xff]  }
  0xe1   : > { %3605 = vmatpush2.bf16.msra.mxu1 %v5077_v9  ;;  %3615 = vmatprep.subr.bf16.mxu0 %v5086_v10  ;;  %v5173_v9 = vld [vmem:[%s6040_s22 + $0x594] ss:$8 sps:$4 sm:$0xff]   ;;  %v5168_v10 = vld [vmem:[%s6040_s22 + $0x490] ss:$8 sps:$4 sm:$0xff]  }
  0xe2   : > { %3656 = vmatprep.subr.bf16.mxu1 %v5089_v11  ;;  %v5171_v11 = vld [vmem:[%s6040_s22 + $0x590] ss:$8 sps:$4 sm:$0xff]  }
  0xe3   : > { %3566 = vmatmul.mubr.bf16.vlgmr.msra.gmra.mxu0 %v4270_v12  ;;  %v5176_v12 = vld [vmem:[%s6040_s22 + $0x484] ss:$8 sps:$4 sm:$0xff]  }
  0xe4   : > { %3607 = vmatmul.mubr.bf16.vlgmr.msra.gmra.mxu1 %v4272_v13  ;;  %3616 = vmatpush1.bf16.msra.mxu0 %v5084_v14  ;;  %v5179_v13 = vld [vmem:[%s6040_s22 + $0x584] ss:$8 sps:$4 sm:$0xff]   ;;  %v5174_v14 = vld [vmem:[%s6040_s22 + $0x480] ss:$8 sps:$4 sm:$0xff]  }
  0xe5   : > { %3657 = vmatpush1.bf16.msra.mxu1 %v5087_v15  ;;  %3617 = vmatprep.subr.bf16.mxu0 %v5092_v16  ;;  %v5177_v15 = vld [vmem:[%s6040_s22 + $0x580] ss:$8 sps:$4 sm:$0xff]   ;;  %v5186_v16 = vld [vmem:[%s6040_s22 + $0x674] ss:$8 sps:$4 sm:$0xff]  }
  0xe6   : > { %3658 = vmatprep.subr.bf16.mxu1 %v5095_v17  ;;  %3647 = vmatprep.mubr.bf16.mxu0 %v4275_v20  ;;  %v5189_v17 = vld [vmem:[%s6040_s22 + $0x774] ss:$8 sps:$4 sm:$0xff]   ;;  %v5184_v20 = vld [vmem:[%s6040_s22 + $0x670] ss:$8 sps:$4 sm:$0xff]  }
  0xe7   : > { %3688 = vmatprep.mubr.bf16.mxu1 %v4277_v21  ;;  %v6261_v21 = vld [vmem:[#allocation2 + $0x30] sm:$0xff] }
  0xe8   : > { %3618 = vmatpush1.bf16.msra.mxu0 %v5090_v22  ;;  %v4274_v22 = vcombine.low %v6192_v18, %v6192_v18 }
  0xe9   : > { %3659 = vmatpush1.bf16.msra.mxu1 %v5093_v23  ;;  %3619 = vmatprep.subr.bf16.mxu0 %v5098_v24  ;;  %v4276_v23 = vcombine.low %v6194_v19, %v6194_v19  ;;  %v6267_v24 = vld [vmem:[#allocation2 + $0x38] sm:$0xff]  ;;  %v5190_v19 = vld [vmem:[%s6040_s22 + $0x660] ss:$8 sps:$4 sm:$0xff]  }
  0xea   : > { %3660 = vmatprep.subr.bf16.mxu1 %v5101_v25  ;;  %v5187_v25 = vld [vmem:[%s6040_s22 + $0x770] ss:$8 sps:$4 sm:$0xff]   ;;  %v4281_v18 = vcombine.high %v6267_v24, %v6267_v24 }
  0xec   : > { %3620 = vmatpush1.bf16.msra.mxu0 %v5096_v26  ;;  %v5192_v26 = vld [vmem:[%s6040_s22 + $0x664] ss:$8 sps:$4 sm:$0xff]  }
  0xed   : > { %3661 = vmatpush1.bf16.msra.mxu1 %v5099_v27  ;;  %3621 = vmatprep.subr.bf16.mxu0 %v5104_v28  ;;  %v5195_v27 = vld [vmem:[%s6040_s22 + $0x764] ss:$8 sps:$4 sm:$0xff]   ;;  %v4279_v28 = vcombine.high %v6261_v21, %v6261_v21 }
  0xee   : > { %3662 = vmatprep.subr.bf16.mxu1 %v5107_v29  ;;  %v5193_v29 = vld [vmem:[%s6040_s22 + $0x760] ss:$8 sps:$4 sm:$0xff]  }
  0xf0   : > { %3622 = vmatpush1.bf16.msra.mxu0 %v5102_v30  ;;  %v5198_v30 = vld [vmem:[%s6040_s22 + $0x654] ss:$8 sps:$4 sm:$0xff]  }
  0xf1   : > { %3663 = vmatpush1.bf16.msra.mxu1 %v5105_v31  ;;  %3623 = vmatprep.subr.bf16.mxu0 %v5110_v32  ;;  %v5201_v31 = vld [vmem:[%s6040_s22 + $0x754] ss:$8 sps:$4 sm:$0xff]   ;;  %v5196_v32 = vld [vmem:[%s6040_s22 + $0x650] ss:$8 sps:$4 sm:$0xff]  }
  0xf2   : > { %3664 = vmatprep.subr.bf16.mxu1 %v5113_v33  ;;  %v5199_v33 = vld [vmem:[%s6040_s22 + $0x750] ss:$8 sps:$4 sm:$0xff]  }
  0xf4   : > { %3624 = vmatpush1.bf16.msra.mxu0 %v5108_v34  ;;  %v5204_v34 = vld [vmem:[%s6040_s22 + $0x644] ss:$8 sps:$4 sm:$0xff]  }
  0xf5   : > { %3665 = vmatpush1.bf16.msra.mxu1 %v5111_v35  ;;  %3625 = vmatprep.subr.bf16.mxu0 %v5116_v36  ;;  %v5207_v35 = vld [vmem:[%s6040_s22 + $0x744] ss:$8 sps:$4 sm:$0xff]   ;;  %v5202_v36 = vld [vmem:[%s6040_s22 + $0x640] ss:$8 sps:$4 sm:$0xff]  }
  0xf6   : > { %3666 = vmatprep.subr.bf16.mxu1 %v5119_v37  ;;  %v5205_v37 = vld [vmem:[%s6040_s22 + $0x740] ss:$8 sps:$4 sm:$0xff]  }
  0xf8   : > { %3626 = vmatpush1.bf16.msra.mxu0 %v5114_v38  ;;  %v5210_v38 = vld [vmem:[%s6040_s22 + $0x634] ss:$8 sps:$4 sm:$0xff]  }
  0xf9   : > { %3667 = vmatpush1.bf16.msra.mxu1 %v5117_v39  ;;  %3627 = vmatprep.subr.bf16.mxu0 %v5122_v40  ;;  %v5213_v39 = vld [vmem:[%s6040_s22 + $0x734] ss:$8 sps:$4 sm:$0xff]   ;;  %v5208_v40 = vld [vmem:[%s6040_s22 + $0x630] ss:$8 sps:$4 sm:$0xff]  }
  0xfa   : > { %3668 = vmatprep.subr.bf16.mxu1 %v5125_v41  ;;  %v5211_v41 = vld [vmem:[%s6040_s22 + $0x730] ss:$8 sps:$4 sm:$0xff]  }
  0xfc   : > { %3628 = vmatpush1.bf16.msra.mxu0 %v5120_v42  ;;  %v5216_v42 = vld [vmem:[%s6040_s22 + $0x624] ss:$8 sps:$4 sm:$0xff]  }
  0xfd   : > { %3669 = vmatpush1.bf16.msra.mxu1 %v5123_v43  ;;  %3629 = vmatprep.subr.bf16.mxu0 %v5128_v44  ;;  %v5219_v43 = vld [vmem:[%s6040_s22 + $0x724] ss:$8 sps:$4 sm:$0xff]   ;;  %v5214_v44 = vld [vmem:[%s6040_s22 + $0x620] ss:$8 sps:$4 sm:$0xff]  }
  0xfe   : > { %3670 = vmatprep.subr.bf16.mxu1 %v5131_v45  ;;  %v5217_v45 = vld [vmem:[%s6040_s22 + $0x720] ss:$8 sps:$4 sm:$0xff]  }
 0x100   : > { %3630 = vmatpush1.bf16.msra.mxu0 %v5126_v46  ;;  %v5222_v46 = vld [vmem:[%s6040_s22 + $0x614] ss:$8 sps:$4 sm:$0xff]  }
 0x101   : > { %3671 = vmatpush1.bf16.msra.mxu1 %v5129_v47  ;;  %3631 = vmatprep.subr.bf16.mxu0 %v5134_v48  ;;  %v5225_v47 = vld [vmem:[%s6040_s22 + $0x714] ss:$8 sps:$4 sm:$0xff]   ;;  %v5220_v48 = vld [vmem:[%s6040_s22 + $0x610] ss:$8 sps:$4 sm:$0xff]  }
 0x102   : > { %3672 = vmatprep.subr.bf16.mxu1 %v5137_v49  ;;  %v5223_v49 = vld [vmem:[%s6040_s22 + $0x710] ss:$8 sps:$4 sm:$0xff]  }
 0x104   : > { %3632 = vmatpush2.bf16.msra.mxu0 %v5132_v50  ;;  %v5228_v50 = vld [vmem:[%s6040_s22 + $0x604] ss:$8 sps:$4 sm:$0xff]  }
 0x105   : > { %3673 = vmatpush2.bf16.msra.mxu1 %v5135_v51  ;;  %3633 = vmatprep.subr.bf16.mxu0 %v5140_v52  ;;  %v5231_v51 = vld [vmem:[%s6040_s22 + $0x704] ss:$8 sps:$4 sm:$0xff]   ;;  %v5226_v52 = vld [vmem:[%s6040_s22 + $0x600] ss:$8 sps:$4 sm:$0xff]  }
 0x106   : > { %3674 = vmatprep.subr.bf16.mxu1 %v5143_v53  ;;  %v5229_v53 = vld [vmem:[%s6040_s22 + $0x700] ss:$8 sps:$4 sm:$0xff]  }
 0x108   : > { %3634 = vmatpush2.bf16.msra.mxu0 %v5138_v54  ;;  %v5234_v54 = vld [vmem:[%s6040_s22 + $0x6f4] ss:$8 sps:$4 sm:$0xff]  }
 0x109   : > { %3675 = vmatpush2.bf16.msra.mxu1 %v5141_v55  ;;  %3635 = vmatprep.subr.bf16.mxu0 %v5146_v56  ;;  %v5237_v55 = vld [vmem:[%s6040_s22 + $0x7f4] ss:$8 sps:$4 sm:$0xff]   ;;  %v5232_v56 = vld [vmem:[%s6040_s22 + $0x6f0] ss:$8 sps:$4 sm:$0xff]  }
 0x10a   : > { %3676 = vmatprep.subr.bf16.mxu1 %v5149_v57  ;;  %v5235_v57 = vld [vmem:[%s6040_s22 + $0x7f0] ss:$8 sps:$4 sm:$0xff]  }
 0x10c   : > { %3636 = vmatpush2.bf16.msra.mxu0 %v5144_v58  ;;  %v5240_v58 = vld [vmem:[%s6040_s22 + $0x6e4] ss:$8 sps:$4 sm:$0xff]  }
 0x10d   : > { %3677 = vmatpush2.bf16.msra.mxu1 %v5147_v59  ;;  %3637 = vmatprep.subr.bf16.mxu0 %v5152_v60  ;;  %v5243_v59 = vld [vmem:[%s6040_s22 + $0x7e4] ss:$8 sps:$4 sm:$0xff]   ;;  %v5238_v60 = vld [vmem:[%s6040_s22 + $0x6e0] ss:$8 sps:$4 sm:$0xff]  }
 0x10e   : > { %3678 = vmatprep.subr.bf16.mxu1 %v5155_v61  ;;  %v5241_v61 = vld [vmem:[%s6040_s22 + $0x7e0] ss:$8 sps:$4 sm:$0xff]  }
 0x110   : > { %3638 = vmatpush2.bf16.msra.mxu0 %v5150_v62  ;;  %v5246_v62 = vld [vmem:[%s6040_s22 + $0x6d4] ss:$8 sps:$4 sm:$0xff]  }
 0x111   : > { %3679 = vmatpush2.bf16.msra.mxu1 %v5153_v63  ;;  %3639 = vmatprep.subr.bf16.mxu0 %v5158_v0  ;;  %v5249_v63 = vld [vmem:[%s6040_s22 + $0x7d4] ss:$8 sps:$4 sm:$0xff]   ;;  %v5244_v0 = vld [vmem:[%s6040_s22 + $0x6d0] ss:$8 sps:$4 sm:$0xff]  }
 0x112   : > { %3680 = vmatprep.subr.bf16.mxu1 %v5161_v1  ;;  %v5247_v1 = vld [vmem:[%s6040_s22 + $0x7d0] ss:$8 sps:$4 sm:$0xff]  }
 0x114   : > { %3640 = vmatpush2.bf16.msra.mxu0 %v5156_v2  ;;  %v5252_v2 = vld [vmem:[%s6040_s22 + $0x6c4] ss:$8 sps:$4 sm:$0xff]  }
 0x115   : > { %3681 = vmatpush2.bf16.msra.mxu1 %v5159_v3  ;;  %3641 = vmatprep.subr.bf16.mxu0 %v5164_v4  ;;  %v5255_v3 = vld [vmem:[%s6040_s22 + $0x7c4] ss:$8 sps:$4 sm:$0xff]   ;;  %v5250_v4 = vld [vmem:[%s6040_s22 + $0x6c0] ss:$8 sps:$4 sm:$0xff]  }
 0x116   : > { %3682 = vmatprep.subr.bf16.mxu1 %v5167_v5  ;;  %v5253_v5 = vld [vmem:[%s6040_s22 + $0x7c0] ss:$8 sps:$4 sm:$0xff]  }
 0x118   : > { %3642 = vmatpush2.bf16.msra.mxu0 %v5162_v6  ;;  %v5258_v6 = vld [vmem:[%s6040_s22 + $0x6b4] ss:$8 sps:$4 sm:$0xff]  }
 0x119   : > { %3683 = vmatpush2.bf16.msra.mxu1 %v5165_v7  ;;  %3643 = vmatprep.subr.bf16.mxu0 %v5170_v8  ;;  %v5261_v7 = vld [vmem:[%s6040_s22 + $0x7b4] ss:$8 sps:$4 sm:$0xff]   ;;  %v5256_v8 = vld [vmem:[%s6040_s22 + $0x6b0] ss:$8 sps:$4 sm:$0xff]  }
 0x11a   : > { %3684 = vmatprep.subr.bf16.mxu1 %v5173_v9  ;;  %v5259_v9 = vld [vmem:[%s6040_s22 + $0x7b0] ss:$8 sps:$4 sm:$0xff]  }
 0x11c   : > { %3644 = vmatpush2.bf16.msra.mxu0 %v5168_v10  ;;  %v5264_v10 = vld [vmem:[%s6040_s22 + $0x6a4] ss:$8 sps:$4 sm:$0xff]  }
 0x11d   : > { %3685 = vmatpush2.bf16.msra.mxu1 %v5171_v11  ;;  %3645 = vmatprep.subr.bf16.mxu0 %v5176_v12  ;;  %v5267_v11 = vld [vmem:[%s6040_s22 + $0x7a4] ss:$8 sps:$4 sm:$0xff]   ;;  %v5262_v12 = vld [vmem:[%s6040_s22 + $0x6a0] ss:$8 sps:$4 sm:$0xff]  }
 0x11e   : > { %3686 = vmatprep.subr.bf16.mxu1 %v5179_v13  ;;  %v5265_v13 = vld [vmem:[%s6040_s22 + $0x7a0] ss:$8 sps:$4 sm:$0xff]  }
 0x120   : > { %3646 = vmatpush2.bf16.msra.mxu0 %v5174_v14  ;;  %v5270_v14 = vld [vmem:[%s6040_s22 + $0x694] ss:$8 sps:$4 sm:$0xff]  }
 0x121   : > { %3687 = vmatpush2.bf16.msra.mxu1 %v5177_v15  ;;  %3697 = vmatprep.subr.bf16.mxu0 %v5186_v16  ;;  %v769_v15 = vlaneseq  ;;  %v5273_v16 = vld [vmem:[%s6040_s22 + $0x794] ss:$8 sps:$4 sm:$0xff]  }
 0x122   : > { %3738 = vmatprep.subr.bf16.mxu1 %v5189_v17  ;;  %v5268_v17 = vld [vmem:[%s6040_s22 + $0x690] ss:$8 sps:$4 sm:$0xff]  }
 0x123   : > { %3648 = vmatmul.mubr.bf16.vlgmr.msra.gmra.mxu0 %v4274_v22  ;;  %v5276_v22 = vld [vmem:[%s6040_s22 + $0x684] ss:$8 sps:$4 sm:$0xff]  }
 0x124   : > { %3689 = vmatmul.mubr.bf16.vlgmr.msra.gmra.mxu1 %v4276_v23  ;;  %3698 = vmatpush1.bf16.msra.mxu0 %v5184_v20  ;;  %v5271_v20 = vld [vmem:[%s6040_s22 + $0x790] ss:$8 sps:$4 sm:$0xff]   ;;  %v770_v23 = vshrl.u32 %v769_v15, 7  ;;  %v5334_v15 = vld [vmem:[%s6040_s22 + $0x8f4] ss:$8 sps:$4 sm:$0xff]  }
 0x125   : > { %3739 = vmatpush1.bf16.msra.mxu1 %v5187_v25  ;;  %3699 = vmatprep.subr.bf16.mxu0 %v5192_v26  ;;  %v5279_v25 = vld [vmem:[%s6040_s22 + $0x784] ss:$8 sps:$4 sm:$0xff]   ;;  %v5274_v26 = vld [vmem:[%s6040_s22 + $0x680] ss:$8 sps:$4 sm:$0xff]  }
 0x126   : > { %3740 = vmatprep.subr.bf16.mxu1 %v5195_v27  ;;  %3729 = vmatprep.mubr.bf16.mxu0 %v4279_v28  ;;  %v5277_v27 = vld [vmem:[%s6040_s22 + $0x780] ss:$8 sps:$4 sm:$0xff]  }
 0x127   : > { %3770 = vmatprep.mubr.bf16.mxu1 %v4281_v18  ;;  %v767_v28 = vld [vmem:[%s209_s4] sm:$0x3]  ;;  %v771_v18 = vsub.s32 0, %v770_v23 }
 0x128   : > { %3700 = vmatpush1.bf16.msra.mxu0 %v5190_v19  ;;  %v5286_v19 = vld [vmem:[%s6040_s22 + $0x874] ss:$8 sps:$4 sm:$0xff]  }
 0x129   : > { %3741 = vmatpush1.bf16.msra.mxu1 %v5193_v29  ;;  %3701 = vmatprep.subr.bf16.mxu0 %v5198_v30  ;;  %v5289_v29 = vld [vmem:[%s6040_s22 + $0x974] ss:$8 sps:$4 sm:$0xff]   ;;  %v5284_v30 = vld [vmem:[%s6040_s22 + $0x870] ss:$8 sps:$4 sm:$0xff]  }
 0x12a   : > { %3742 = vmatprep.subr.bf16.mxu1 %v5201_v31  ;;  %v775_v31 = vsub.s32 1, %v770_v23  ;;  %v5343_v23 = vld [vmem:[%s6040_s22 + $0x9e4] ss:$8 sps:$4 sm:$0xff]  }
 0x12c   : > { %3702 = vmatpush1.bf16.msra.mxu0 %v5196_v32  ;;  %v4278_v32 = vcombine.low %v6261_v21, %v6261_v21 }
 0x12d   : > { %3743 = vmatpush1.bf16.msra.mxu1 %v5199_v33  ;;  %3703 = vmatprep.subr.bf16.mxu0 %v5204_v34  ;;  %v4280_v33 = vcombine.low %v6267_v24, %v6267_v24  ;;  %v6342_v34 = vld [vmem:[#allocation2 + $0x40] sm:$0xff] }
 0x12e   : > { %3744 = vmatprep.subr.bf16.mxu1 %v5207_v35  ;;  %v6344_v35 = vld [vmem:[#allocation2 + $0x48] sm:$0xff]  ;;  %v4283_v21 = vcombine.high %v6342_v34, %v6342_v34 }
 0x12f   : > { %v4285_v24 = vcombine.high %v6344_v35, %v6344_v35 }
 0x130   : > { %3704 = vmatpush1.bf16.msra.mxu0 %v5202_v36  ;;  %v772_v36 = vrot.slane %v767_v28, %v771_v18  ;;  %v5344_v18 = vld [vmem:[%s6040_s22 + $0x8d0] ss:$8 sps:$4 sm:$0xff]  }
 0x131   : > { %3745 = vmatpush1.bf16.msra.mxu1 %v5205_v37  ;;  %3705 = vmatprep.subr.bf16.mxu0 %v5210_v38  ;;  %v5287_v37 = vld [vmem:[%s6040_s22 + $0x970] ss:$8 sps:$4 sm:$0xff]   ;;  %v5292_v38 = vld [vmem:[%s6040_s22 + $0x864] ss:$8 sps:$4 sm:$0xff]  }
 0x132   : > { %3746 = vmatprep.subr.bf16.mxu1 %v5213_v39  ;;  %v5295_v39 = vld [vmem:[%s6040_s22 + $0x964] ss:$8 sps:$4 sm:$0xff]  }
 0x134   : > { %3706 = vmatpush1.bf16.msra.mxu0 %v5208_v40  ;;  %v776_v40 = vrot.slane %v767_v28, %v775_v31  ;;  %v5349_v28 = vld [vmem:[%s6040_s22 + $0x9d4] ss:$8 sps:$4 sm:$0xff]   ;;  %v5350_v31 = vld [vmem:[%s6040_s22 + $0x8c0] ss:$8 sps:$4 sm:$0xff]  }
 0x135   : > { %3747 = vmatpush1.bf16.msra.mxu1 %v5211_v41  ;;  %3707 = vmatprep.subr.bf16.mxu0 %v5216_v42 }
 0x136   : > { %3748 = vmatprep.subr.bf16.mxu1 %v5219_v43  ;;  %v5290_v43 = vld [vmem:[%s6040_s22 + $0x860] ss:$8 sps:$4 sm:$0xff]  }
 0x138   : > { %3708 = vmatpush1.bf16.msra.mxu0 %v5214_v44 }
 0x139   : > { %3749 = vmatpush1.bf16.msra.mxu1 %v5217_v45  ;;  %3709 = vmatprep.subr.bf16.mxu0 %v5222_v46  ;;  %v5293_v45 = vld [vmem:[%s6040_s22 + $0x960] ss:$8 sps:$4 sm:$0xff]  }
 0x13a   : > { %3750 = vmatprep.subr.bf16.mxu1 %v5225_v47 }
 0x13c   : > { %3710 = vmatpush1.bf16.msra.mxu0 %v5220_v48  ;;  %v5298_v48 = vld [vmem:[%s6040_s22 + $0x854] ss:$8 sps:$4 sm:$0xff]  }
 0x13d   : > { %3751 = vmatpush1.bf16.msra.mxu1 %v5223_v49  ;;  %3711 = vmatprep.subr.bf16.mxu0 %v5228_v50  ;;  %v5301_v49 = vld [vmem:[%s6040_s22 + $0x954] ss:$8 sps:$4 sm:$0xff]  }
 0x13e   : > { %3752 = vmatprep.subr.bf16.mxu1 %v5231_v51 }
 0x140   : > { %3712 = vmatpush1.bf16.msra.mxu0 %v5226_v52 }
 0x141   : > { %3753 = vmatpush1.bf16.msra.mxu1 %v5229_v53  ;;  %3713 = vmatprep.subr.bf16.mxu0 %v5234_v54  ;;  %v5296_v54 = vld [vmem:[%s6040_s22 + $0x850] ss:$8 sps:$4 sm:$0xff]  }
 0x142   : > { %3754 = vmatprep.subr.bf16.mxu1 %v5237_v55 }
 0x144   : > { %3714 = vmatpush2.bf16.msra.mxu0 %v5232_v56  ;;  %v5299_v56 = vld [vmem:[%s6040_s22 + $0x950] ss:$8 sps:$4 sm:$0xff]  }
 0x145   : > { %3755 = vmatpush2.bf16.msra.mxu1 %v5235_v57  ;;  %3715 = vmatprep.subr.bf16.mxu0 %v5240_v58 }
 0x146   : > { %3756 = vmatprep.subr.bf16.mxu1 %v5243_v59  ;;  %v5304_v59 = vld [vmem:[%s6040_s22 + $0x844] ss:$8 sps:$4 sm:$0xff]  }
 0x148   : > { %3716 = vmatpush2.bf16.msra.mxu0 %v5238_v60  ;;  %v5307_v60 = vld [vmem:[%s6040_s22 + $0x944] ss:$8 sps:$4 sm:$0xff]  }
 0x149   : > { %3757 = vmatpush2.bf16.msra.mxu1 %v5241_v61  ;;  %3717 = vmatprep.subr.bf16.mxu0 %v5246_v62  ;;  %v5302_v61 = vld [vmem:[%s6040_s22 + $0x840] ss:$8 sps:$4 sm:$0xff]  }
 0x14a   : > { %3758 = vmatprep.subr.bf16.mxu1 %v5249_v63  ;;  %v5305_v62 = vld [vmem:[%s6040_s22 + $0x940] ss:$8 sps:$4 sm:$0xff]   ;;  %v5310_v63 = vld [vmem:[%s6040_s22 + $0x834] ss:$8 sps:$4 sm:$0xff]  }
 0x14c   : > { %3718 = vmatpush2.bf16.msra.mxu0 %v5244_v0  ;;  %v5313_v0 = vld [vmem:[%s6040_s22 + $0x934] ss:$8 sps:$4 sm:$0xff]  }
 0x14d   : > { %3759 = vmatpush2.bf16.msra.mxu1 %v5247_v1  ;;  %3719 = vmatprep.subr.bf16.mxu0 %v5252_v2  ;;  %v5308_v1 = vld [vmem:[%s6040_s22 + $0x830] ss:$8 sps:$4 sm:$0xff]  }
 0x14e   : > { %3760 = vmatprep.subr.bf16.mxu1 %v5255_v3  ;;  %v5311_v2 = vld [vmem:[%s6040_s22 + $0x930] ss:$8 sps:$4 sm:$0xff]   ;;  %v5316_v3 = vld [vmem:[%s6040_s22 + $0x824] ss:$8 sps:$4 sm:$0xff]  }
 0x150   : > { %3720 = vmatpush2.bf16.msra.mxu0 %v5250_v4  ;;  %v5319_v4 = vld [vmem:[%s6040_s22 + $0x924] ss:$8 sps:$4 sm:$0xff]  }
 0x151   : > { %3761 = vmatpush2.bf16.msra.mxu1 %v5253_v5  ;;  %3721 = vmatprep.subr.bf16.mxu0 %v5258_v6  ;;  %v5314_v5 = vld [vmem:[%s6040_s22 + $0x820] ss:$8 sps:$4 sm:$0xff]  }
 0x152   : > { %3762 = vmatprep.subr.bf16.mxu1 %v5261_v7  ;;  %v5317_v6 = vld [vmem:[%s6040_s22 + $0x920] ss:$8 sps:$4 sm:$0xff]   ;;  %v5322_v7 = vld [vmem:[%s6040_s22 + $0x814] ss:$8 sps:$4 sm:$0xff]  }
 0x154   : > { %3722 = vmatpush2.bf16.msra.mxu0 %v5256_v8  ;;  %v5325_v8 = vld [vmem:[%s6040_s22 + $0x914] ss:$8 sps:$4 sm:$0xff]  }
 0x155   : > { %3763 = vmatpush2.bf16.msra.mxu1 %v5259_v9  ;;  %3723 = vmatprep.subr.bf16.mxu0 %v5264_v10  ;;  %v5320_v9 = vld [vmem:[%s6040_s22 + $0x810] ss:$8 sps:$4 sm:$0xff]  }
 0x156   : > { %3764 = vmatprep.subr.bf16.mxu1 %v5267_v11  ;;  %v5323_v10 = vld [vmem:[%s6040_s22 + $0x910] ss:$8 sps:$4 sm:$0xff]   ;;  %v5328_v11 = vld [vmem:[%s6040_s22 + $0x804] ss:$8 sps:$4 sm:$0xff]  }
 0x158   : > { %3724 = vmatpush2.bf16.msra.mxu0 %v5262_v12  ;;  %v5331_v12 = vld [vmem:[%s6040_s22 + $0x904] ss:$8 sps:$4 sm:$0xff]  }
 0x159   : > { %3765 = vmatpush2.bf16.msra.mxu1 %v5265_v13  ;;  %3725 = vmatprep.subr.bf16.mxu0 %v5270_v14  ;;  %v5326_v13 = vld [vmem:[%s6040_s22 + $0x800] ss:$8 sps:$4 sm:$0xff]  }
 0x15a   : > { %3766 = vmatprep.subr.bf16.mxu1 %v5273_v16  ;;  %v5329_v14 = vld [vmem:[%s6040_s22 + $0x900] ss:$8 sps:$4 sm:$0xff]   ;;  %v5337_v16 = vld [vmem:[%s6040_s22 + $0x9f4] ss:$8 sps:$4 sm:$0xff]  }
 0x15c   : > { %3726 = vmatpush2.bf16.msra.mxu0 %v5268_v17  ;;  %v5332_v17 = vld [vmem:[%s6040_s22 + $0x8f0] ss:$8 sps:$4 sm:$0xff]  }
 0x15d   : > { %3767 = vmatpush2.bf16.msra.mxu1 %v5271_v20  ;;  %3727 = vmatprep.subr.bf16.mxu0 %v5276_v22  ;;  %v5335_v20 = vld [vmem:[%s6040_s22 + $0x9f0] ss:$8 sps:$4 sm:$0xff]   ;;  %v5340_v22 = vld [vmem:[%s6040_s22 + $0x8e4] ss:$8 sps:$4 sm:$0xff]  }
 0x15e   : > { %3768 = vmatprep.subr.bf16.mxu1 %v5279_v25  ;;  %v5338_v25 = vld [vmem:[%s6040_s22 + $0x8e0] ss:$8 sps:$4 sm:$0xff]  }
 0x160   : > { %3728 = vmatpush2.bf16.msra.mxu0 %v5274_v26  ;;  %v5341_v26 = vld [vmem:[%s6040_s22 + $0x9e0] ss:$8 sps:$4 sm:$0xff]  }
 0x161   : > { %3769 = vmatpush2.bf16.msra.mxu1 %v5277_v27  ;;  %3779 = vmatprep.subr.bf16.mxu0 %v5286_v19  ;;  %v5346_v27 = vld [vmem:[%s6040_s22 + $0x8d4] ss:$8 sps:$4 sm:$0xff]   ;;  %v5347_v19 = vld [vmem:[%s6040_s22 + $0x9d0] ss:$8 sps:$4 sm:$0xff]  }
 0x162   : > { %3820 = vmatprep.subr.bf16.mxu1 %v5289_v29  ;;  %v5352_v29 = vld [vmem:[%s6040_s22 + $0x8c4] ss:$8 sps:$4 sm:$0xff]  }
 0x163   : > { %v3485_v41 = vpop.f32.mrf.mxu0  ;;  %3730 = vmatmul.mubr.bf16.vlgmr.msra.gmra.mxu0 %v4278_v32  ;;  %v5353_v32 = vld [vmem:[%s6040_s22 + $0x9c0] ss:$8 sps:$4 sm:$0xff]  }
 0x164   : > { %v3526_v42 = vpop.f32.mrf.mxu1  ;;  %3771 = vmatmul.mubr.bf16.vlgmr.msra.gmra.mxu1 %v4280_v33  ;;  %v3486_v44 = vadd.f32 %v3485_v41, %v772_v36  ;;  %3780 = vmatpush1.bf16.msra.mxu0 %v5284_v30  ;;  %v5355_v30 = vld [vmem:[%s6040_s22 + $0x9c4] ss:$8 sps:$4 sm:$0xff]   ;;  %v5358_v33 = vld [vmem:[%s6040_s22 + $0x8b4] ss:$8 sps:$4 sm:$0xff]  }
 0x165   : > { %3821 = vmatpush1.bf16.msra.mxu1 %v5287_v37  ;;  %v3487_v46 = vpop.f32.mrf.mxu0  ;;  %3781 = vmatprep.subr.bf16.mxu0 %v5292_v38  ;;  %v5361_v36 = vld [vmem:[%s6040_s22 + $0x9b4] ss:$8 sps:$4 sm:$0xff]   ;;  %v5356_v37 = vld [vmem:[%s6040_s22 + $0x8b0] ss:$8 sps:$4 sm:$0xff]  }
 0x166   : > { %v3528_v47 = vpop.f32.mrf.mxu1  ;;  %3822 = vmatprep.subr.bf16.mxu1 %v5295_v39  ;;  %v6357_v50 = vadd.f32 %v3526_v42, %v3486_v44  ;;  %v3488_v51 = vadd.f32 %v3487_v46, %v776_v40  ;;  %3811 = vmatprep.mubr.bf16.mxu0 %v4283_v21  ;;  %v5359_v38 = vld [vmem:[%s6040_s22 + $0x9b0] ss:$8 sps:$4 sm:$0xff]   ;;  %v5364_v39 = vld [vmem:[%s6040_s22 + $0x8a4] ss:$8 sps:$4 sm:$0xff]   ;;  %v5362_v21 = vld [vmem:[%s6040_s22 + $0x8a0] ss:$8 sps:$4 sm:$0xff]  }
 0x167   : > { %3852 = vmatprep.mubr.bf16.mxu1 %v4285_v24  ;;  %v3489_v52 = vpop.f32.mrf.mxu0  ;;  %v5367_v40 = vld [vmem:[%s6040_s22 + $0x9a4] ss:$8 sps:$4 sm:$0xff]   ;;  %v5365_v24 = vld [vmem:[%s6040_s22 + $0x9a0] ss:$8 sps:$4 sm:$0xff]   ;;  %v5370_v41 = vld [vmem:[%s6040_s22 + $0x894] ss:$8 sps:$4 sm:$0xff]  }
 0x168   : > { %v3530_v53 = vpop.f32.mrf.mxu1  ;;  %v6360_v55 = vadd.f32 %v3528_v47, %v3488_v51  ;;  %3782 = vmatpush1.bf16.msra.mxu0 %v5290_v43  ;;  %v5373_v42 = vld [vmem:[%s6040_s22 + $0x994] ss:$8 sps:$4 sm:$0xff]   ;;  %v5368_v43 = vld [vmem:[%s6040_s22 + $0x890] ss:$8 sps:$4 sm:$0xff]   ;;  %v5379_v46 = vld [vmem:[%s6040_s22 + $0x984] ss:$8 sps:$4 sm:$0xff]  }
 0x169   : > { %3823 = vmatpush1.bf16.msra.mxu1 %v5293_v45  ;;  %v3490_v57 = vpop.f32.mrf.mxu0  ;;  %3783 = vmatprep.subr.bf16.mxu0 %v5298_v48  ;;  %v5371_v44 = vld [vmem:[%s6040_s22 + $0x990] ss:$8 sps:$4 sm:$0xff]   ;;  %v5376_v45 = vld [vmem:[%s6040_s22 + $0x884] ss:$8 sps:$4 sm:$0xff]   ;;  %v5374_v47 = vld [vmem:[%s6040_s22 + $0x880] ss:$8 sps:$4 sm:$0xff]  }
 0x16a   : > { %v3531_v58 = vpop.f32.mrf.mxu1  ;;  %3824 = vmatprep.subr.bf16.mxu1 %v5301_v49  ;;  %v5377_v48 = vld [vmem:[%s6040_s22 + $0x980] ss:$8 sps:$4 sm:$0xff]   ;;  %v5386_v49 = vld [vmem:[%s6040_s22 + $0xa74] ss:$8 sps:$4 sm:$0xff]   ;;  %v5384_v52 = vld [vmem:[%s6040_s22 + $0xa70] ss:$8 sps:$4 sm:$0xff]  }
 0x16b   : > { %v5389_v51 = vld [vmem:[%s6040_s22 + $0xb74] ss:$8 sps:$4 sm:$0xff]   ;;  %v5387_v53 = vld [vmem:[%s6040_s22 + $0xb70] ss:$8 sps:$4 sm:$0xff]  }
 0x16c   : > { %3784 = vmatpush1.bf16.msra.mxu0 %v5296_v54  ;;  %v4282_v54 = vcombine.low %v6342_v34, %v6342_v34  ;;  %v6423_v57 = vld [vmem:[#allocation2 + $0x50] sm:$0xff]  ;;  %v6425_v58 = vld [vmem:[#allocation2 + $0x58] sm:$0xff] }
 0x16d   : > { %3825 = vmatpush1.bf16.msra.mxu1 %v5299_v56  ;;  %3785 = vmatprep.subr.bf16.mxu0 %v5304_v59  ;;  %v4284_v56 = vcombine.low %v6344_v35, %v6344_v35  ;;  %v5392_v59 = vld [vmem:[%s6040_s22 + $0xa64] ss:$8 sps:$4 sm:$0xff]   ;;  %v4287_v34 = vcombine.high %v6423_v57, %v6423_v57  ;;  %v4289_v35 = vcombine.high %v6425_v58, %v6425_v58 }
 0x16e   : > { %3826 = vmatprep.subr.bf16.mxu1 %v5307_v60  ;;  %v5395_v60 = vld [vmem:[%s6040_s22 + $0xb64] ss:$8 sps:$4 sm:$0xff]  }
 0x170   : > { %3786 = vmatpush1.bf16.msra.mxu0 %v5302_v61  ;;  %v5390_v61 = vld [vmem:[%s6040_s22 + $0xa60] ss:$8 sps:$4 sm:$0xff]  }
 0x171   : > { %3827 = vmatpush1.bf16.msra.mxu1 %v5305_v62  ;;  %3787 = vmatprep.subr.bf16.mxu0 %v5310_v63  ;;  %v5393_v62 = vld [vmem:[%s6040_s22 + $0xb60] ss:$8 sps:$4 sm:$0xff]  }
 0x172   : > { %3828 = vmatprep.subr.bf16.mxu1 %v5313_v0 }
 0x174   : > { %3788 = vmatpush1.bf16.msra.mxu0 %v5308_v1 }
 0x175   : > { %3829 = vmatpush1.bf16.msra.mxu1 %v5311_v2  ;;  %3789 = vmatprep.subr.bf16.mxu0 %v5316_v3 }
 0x176   : > { %3830 = vmatprep.subr.bf16.mxu1 %v5319_v4  ;;  %v5398_v4 = vld [vmem:[%s6040_s22 + $0xa54] ss:$8 sps:$4 sm:$0xff]  }
 0x178   : > { %3790 = vmatpush1.bf16.msra.mxu0 %v5314_v5  ;;  %v5401_v5 = vld [vmem:[%s6040_s22 + $0xb54] ss:$8 sps:$4 sm:$0xff]  }
 0x179   : > { %3831 = vmatpush1.bf16.msra.mxu1 %v5317_v6  ;;  %3791 = vmatprep.subr.bf16.mxu0 %v5322_v7 }
 0x17a   : > { %3832 = vmatprep.subr.bf16.mxu1 %v5325_v8 }
 0x17c   : > { %3792 = vmatpush1.bf16.msra.mxu0 %v5320_v9 }
 0x17d   : > { %3833 = vmatpush1.bf16.msra.mxu1 %v5323_v10  ;;  %3793 = vmatprep.subr.bf16.mxu0 %v5328_v11  ;;  %v5396_v10 = vld [vmem:[%s6040_s22 + $0xa50] ss:$8 sps:$4 sm:$0xff]  }
 0x17e   : > { %3834 = vmatprep.subr.bf16.mxu1 %v5331_v12  ;;  %v5399_v11 = vld [vmem:[%s6040_s22 + $0xb50] ss:$8 sps:$4 sm:$0xff]  }
 0x180   : > { %3794 = vmatpush1.bf16.msra.mxu0 %v5326_v13 }
 0x181   : > { %3835 = vmatpush1.bf16.msra.mxu1 %v5329_v14  ;;  %3795 = vmatprep.subr.bf16.mxu0 %v5334_v15  ;;  %v5407_v14 = vld [vmem:[%s6040_s22 + $0xb44] ss:$8 sps:$4 sm:$0xff]   ;;  %v5402_v15 = vld [vmem:[%s6040_s22 + $0xa40] ss:$8 sps:$4 sm:$0xff]  }
 0x182   : > { %3836 = vmatprep.subr.bf16.mxu1 %v5337_v16  ;;  %v5405_v16 = vld [vmem:[%s6040_s22 + $0xb40] ss:$8 sps:$4 sm:$0xff]  }
 0x184   : > { %3796 = vmatpush2.bf16.msra.mxu0 %v5332_v17  ;;  %v5410_v17 = vld [vmem:[%s6040_s22 + $0xa34] ss:$8 sps:$4 sm:$0xff]  }
 0x185   : > { %3837 = vmatpush2.bf16.msra.mxu1 %v5335_v20  ;;  %3797 = vmatprep.subr.bf16.mxu0 %v5340_v22  ;;  %v5413_v20 = vld [vmem:[%s6040_s22 + $0xb34] ss:$8 sps:$4 sm:$0xff]   ;;  %v5408_v22 = vld [vmem:[%s6040_s22 + $0xa30] ss:$8 sps:$4 sm:$0xff]  }
 0x186   : > { %3838 = vmatprep.subr.bf16.mxu1 %v5343_v23  ;;  %v5411_v23 = vld [vmem:[%s6040_s22 + $0xb30] ss:$8 sps:$4 sm:$0xff]  }
 0x188   : > { %3798 = vmatpush2.bf16.msra.mxu0 %v5338_v25  ;;  %v5416_v25 = vld [vmem:[%s6040_s22 + $0xa24] ss:$8 sps:$4 sm:$0xff]  }
 0x189   : > { %3839 = vmatpush2.bf16.msra.mxu1 %v5341_v26  ;;  %3799 = vmatprep.subr.bf16.mxu0 %v5346_v27  ;;  %v5419_v26 = vld [vmem:[%s6040_s22 + $0xb24] ss:$8 sps:$4 sm:$0xff]   ;;  %v5414_v27 = vld [vmem:[%s6040_s22 + $0xa20] ss:$8 sps:$4 sm:$0xff]  }
 0x18a   : > { %3840 = vmatprep.subr.bf16.mxu1 %v5349_v28  ;;  %v5417_v28 = vld [vmem:[%s6040_s22 + $0xb20] ss:$8 sps:$4 sm:$0xff]  }
 0x18c   : > { %3800 = vmatpush2.bf16.msra.mxu0 %v5344_v18  ;;  %v5422_v18 = vld [vmem:[%s6040_s22 + $0xa14] ss:$8 sps:$4 sm:$0xff]  }
 0x18d   : > { %3841 = vmatpush2.bf16.msra.mxu1 %v5347_v19  ;;  %3801 = vmatprep.subr.bf16.mxu0 %v5352_v29  ;;  %v5425_v19 = vld [vmem:[%s6040_s22 + $0xb14] ss:$8 sps:$4 sm:$0xff]   ;;  %v5420_v29 = vld [vmem:[%s6040_s22 + $0xa10] ss:$8 sps:$4 sm:$0xff]  }
 0x18e   : > { %3842 = vmatprep.subr.bf16.mxu1 %v5355_v30  ;;  %v5423_v30 = vld [vmem:[%s6040_s22 + $0xb10] ss:$8 sps:$4 sm:$0xff]  }
 0x190   : > { %3802 = vmatpush2.bf16.msra.mxu0 %v5350_v31  ;;  %v5428_v31 = vld [vmem:[%s6040_s22 + $0xa04] ss:$8 sps:$4 sm:$0xff]  }
 0x191   : > { %3843 = vmatpush2.bf16.msra.mxu1 %v5353_v32  ;;  %3803 = vmatprep.subr.bf16.mxu0 %v5358_v33  ;;  %v5431_v32 = vld [vmem:[%s6040_s22 + $0xb04] ss:$8 sps:$4 sm:$0xff]   ;;  %v5426_v33 = vld [vmem:[%s6040_s22 + $0xa00] ss:$8 sps:$4 sm:$0xff]  }
 0x192   : > { %3844 = vmatprep.subr.bf16.mxu1 %v5361_v36  ;;  %v5429_v36 = vld [vmem:[%s6040_s22 + $0xb00] ss:$8 sps:$4 sm:$0xff]  }
 0x194   : > { %3804 = vmatpush2.bf16.msra.mxu0 %v5356_v37  ;;  %v5434_v37 = vld [vmem:[%s6040_s22 + $0xaf4] ss:$8 sps:$4 sm:$0xff]  }
 0x195   : > { %3845 = vmatpush2.bf16.msra.mxu1 %v5359_v38  ;;  %3805 = vmatprep.subr.bf16.mxu0 %v5364_v39  ;;  %v5437_v38 = vld [vmem:[%s6040_s22 + $0xbf4] ss:$8 sps:$4 sm:$0xff]   ;;  %v5432_v39 = vld [vmem:[%s6040_s22 + $0xaf0] ss:$8 sps:$4 sm:$0xff]  }
 0x196   : > { %3846 = vmatprep.subr.bf16.mxu1 %v5367_v40  ;;  %v5435_v40 = vld [vmem:[%s6040_s22 + $0xbf0] ss:$8 sps:$4 sm:$0xff]  }
 0x198   : > { %3806 = vmatpush2.bf16.msra.mxu0 %v5362_v21  ;;  %v5440_v21 = vld [vmem:[%s6040_s22 + $0xae4] ss:$8 sps:$4 sm:$0xff]  }
 0x199   : > { %3847 = vmatpush2.bf16.msra.mxu1 %v5365_v24  ;;  %3807 = vmatprep.subr.bf16.mxu0 %v5370_v41  ;;  %v5443_v24 = vld [vmem:[%s6040_s22 + $0xbe4] ss:$8 sps:$4 sm:$0xff]   ;;  %v5438_v41 = vld [vmem:[%s6040_s22 + $0xae0] ss:$8 sps:$4 sm:$0xff]  }
 0x19a   : > { %3848 = vmatprep.subr.bf16.mxu1 %v5373_v42  ;;  %v5441_v42 = vld [vmem:[%s6040_s22 + $0xbe0] ss:$8 sps:$4 sm:$0xff]  }
 0x19c   : > { %3808 = vmatpush2.bf16.msra.mxu0 %v5368_v43  ;;  %v5446_v43 = vld [vmem:[%s6040_s22 + $0xad4] ss:$8 sps:$4 sm:$0xff]  }
 0x19d   : > { %3849 = vmatpush2.bf16.msra.mxu1 %v5371_v44  ;;  %3809 = vmatprep.subr.bf16.mxu0 %v5376_v45  ;;  %v5449_v44 = vld [vmem:[%s6040_s22 + $0xbd4] ss:$8 sps:$4 sm:$0xff]   ;;  %v5444_v45 = vld [vmem:[%s6040_s22 + $0xad0] ss:$8 sps:$4 sm:$0xff]  }
 0x19e   : > { %3850 = vmatprep.subr.bf16.mxu1 %v5379_v46  ;;  %v5447_v46 = vld [vmem:[%s6040_s22 + $0xbd0] ss:$8 sps:$4 sm:$0xff]  }
 0x1a0   : > { %3810 = vmatpush2.bf16.msra.mxu0 %v5374_v47  ;;  %v5452_v47 = vld [vmem:[%s6040_s22 + $0xac4] ss:$8 sps:$4 sm:$0xff]  }
 0x1a1   : > { %3851 = vmatpush2.bf16.msra.mxu1 %v5377_v48  ;;  %3861 = vmatprep.subr.bf16.mxu0 %v5386_v49  ;;  %v5455_v48 = vld [vmem:[%s6040_s22 + $0xbc4] ss:$8 sps:$4 sm:$0xff]   ;;  %v5450_v49 = vld [vmem:[%s6040_s22 + $0xac0] ss:$8 sps:$4 sm:$0xff]  }
 0x1a2   : > { %3902 = vmatprep.subr.bf16.mxu1 %v5389_v51  ;;  %v5453_v51 = vld [vmem:[%s6040_s22 + $0xbc0] ss:$8 sps:$4 sm:$0xff]  }
 0x1a3   : > { %v3567_v63 = vpop.f32.mrf.mxu0  ;;  %3812 = vmatmul.mubr.bf16.vlgmr.msra.gmra.mxu0 %v4282_v54  ;;  %v5456_v54 = vld [vmem:[%s6040_s22 + $0xab0] ss:$8 sps:$4 sm:$0xff]  }
 0x1a4   : > { %v3608_v0 = vpop.f32.mrf.mxu1  ;;  %3853 = vmatmul.mubr.bf16.vlgmr.msra.gmra.mxu1 %v4284_v56  ;;  %v3568_v1 = vadd.f32 %v3567_v63, %v6357_v50  ;;  %3862 = vmatpush1.bf16.msra.mxu0 %v5384_v52  ;;  %v5458_v52 = vld [vmem:[%s6040_s22 + $0xab4] ss:$8 sps:$4 sm:$0xff]   ;;  %v5459_v56 = vld [vmem:[%s6040_s22 + $0xbb0] ss:$8 sps:$4 sm:$0xff]  }
 0x1a5   : > { %3903 = vmatpush1.bf16.msra.mxu1 %v5387_v53  ;;  %v3569_v2 = vpop.f32.mrf.mxu0  ;;  %3863 = vmatprep.subr.bf16.mxu0 %v5392_v59  ;;  %v5461_v53 = vld [vmem:[%s6040_s22 + $0xbb4] ss:$8 sps:$4 sm:$0xff]   ;;  %v5464_v59 = vld [vmem:[%s6040_s22 + $0xaa4] ss:$8 sps:$4 sm:$0xff]   ;;  %v5468_v63 = vld [vmem:[%s6040_s22 + $0xa90] ss:$8 sps:$4 sm:$0xff]  }
 0x1a6   : > { %v3610_v3 = vpop.f32.mrf.mxu1  ;;  %3904 = vmatprep.subr.bf16.mxu1 %v5395_v60  ;;  %v6438_v6 = vadd.f32 %v3608_v0, %v3568_v1  ;;  %v3570_v7 = vadd.f32 %v3569_v2, %v6360_v55  ;;  %3893 = vmatprep.mubr.bf16.mxu0 %v4287_v34  ;;  %v5404_v55 = vld [vmem:[%s6040_s22 + $0xa44] ss:$8 sps:$4 sm:$0xff]   ;;  %v5470_v34 = vld [vmem:[%s6040_s22 + $0xa94] ss:$8 sps:$4 sm:$0xff]   ;;  %v5471_v0 = vld [vmem:[%s6040_s22 + $0xb90] ss:$8 sps:$4 sm:$0xff]  }
 0x1a7   : > { %3934 = vmatprep.mubr.bf16.mxu1 %v4289_v35  ;;  %v3571_v50 = vpop.f32.mrf.mxu0  ;;  %v5467_v60 = vld [vmem:[%s6040_s22 + $0xba4] ss:$8 sps:$4 sm:$0xff]   ;;  %v5473_v35 = vld [vmem:[%s6040_s22 + $0xb94] ss:$8 sps:$4 sm:$0xff]  }
 0x1a8   : > { %v3612_v8 = vpop.f32.mrf.mxu1  ;;  %v6441_v9 = vadd.f32 %v3610_v3, %v3570_v7  ;;  %3864 = vmatpush1.bf16.msra.mxu0 %v5390_v61  ;;  %v5462_v61 = vld [vmem:[%s6040_s22 + $0xaa0] ss:$8 sps:$4 sm:$0xff]   ;;  %v5476_v1 = vld [vmem:[%s6040_s22 + $0xa84] ss:$8 sps:$4 sm:$0xff]   ;;  %v5489_v7 = vld [vmem:[%s6040_s22 + $0xd74] ss:$8 sps:$4 sm:$0xff]   ;;  %v4286_v50 = vcombine.low %v6423_v57, %v6423_v57 }
 0x1a9   : > { %3905 = vmatpush1.bf16.msra.mxu1 %v5393_v62  ;;  %v3572_v12 = vpop.f32.mrf.mxu0  ;;  %3865 = vmatprep.subr.bf16.mxu0 %v5398_v4  ;;  %v5465_v62 = vld [vmem:[%s6040_s22 + $0xba0] ss:$8 sps:$4 sm:$0xff]   ;;  %v5479_v2 = vld [vmem:[%s6040_s22 + $0xb84] ss:$8 sps:$4 sm:$0xff]   ;;  %v4288_v8 = vcombine.low %v6425_v58, %v6425_v58 }
 0x1aa   : > { %v3613_v13 = vpop.f32.mrf.mxu1  ;;  %3906 = vmatprep.subr.bf16.mxu1 %v5401_v5  ;;  %v5474_v3 = vld [vmem:[%s6040_s22 + $0xa80] ss:$8 sps:$4 sm:$0xff]   ;;  %v5486_v5 = vld [vmem:[%s6040_s22 + $0xc74] ss:$8 sps:$4 sm:$0xff]   ;;  %v5484_v12 = vld [vmem:[%s6040_s22 + $0xc70] ss:$8 sps:$4 sm:$0xff]  }
 0x1ab   : > { %v5477_v4 = vld [vmem:[%s6040_s22 + $0xb80] ss:$8 sps:$4 sm:$0xff]   ;;  %v5487_v13 = vld [vmem:[%s6040_s22 + $0xd70] ss:$8 sps:$4 sm:$0xff]  }
 0x1ac   : > { %3866 = vmatpush1.bf16.msra.mxu0 %v5396_v10  ;;  %v6503_v10 = vld [vmem:[#allocation2 + $0x60] sm:$0xff] }
 0x1ad   : > { %3907 = vmatpush1.bf16.msra.mxu1 %v5399_v11  ;;  %3867 = vmatprep.subr.bf16.mxu0 %v5404_v55  ;;  %v6505_v11 = vld [vmem:[#allocation2 + $0x68] sm:$0xff]  ;;  %v4291_v57 = vcombine.high %v6503_v10, %v6503_v10 }
 0x1ae   : > { %3908 = vmatprep.subr.bf16.mxu1 %v5407_v14  ;;  %v5492_v55 = vld [vmem:[%s6040_s22 + $0xc64] ss:$8 sps:$4 sm:$0xff]   ;;  %v4293_v58 = vcombine.high %v6505_v11, %v6505_v11 }
 0x1af   : > { %v5495_v14 = vld [vmem:[%s6040_s22 + $0xd64] ss:$8 sps:$4 sm:$0xff]  }
 0x1b0   : > { %3868 = vmatpush1.bf16.msra.mxu0 %v5402_v15 }
 0x1b1   : > { %3909 = vmatpush1.bf16.msra.mxu1 %v5405_v16  ;;  %3869 = vmatprep.subr.bf16.mxu0 %v5410_v17 }
 0x1b2   : > { %3910 = vmatprep.subr.bf16.mxu1 %v5413_v20  ;;  %v5490_v20 = vld [vmem:[%s6040_s22 + $0xc60] ss:$8 sps:$4 sm:$0xff]  }
 0x1b4   : > { %3870 = vmatpush1.bf16.msra.mxu0 %v5408_v22  ;;  %v5493_v22 = vld [vmem:[%s6040_s22 + $0xd60] ss:$8 sps:$4 sm:$0xff]  }
 0x1b5   : > { %3911 = vmatpush1.bf16.msra.mxu1 %v5411_v23  ;;  %3871 = vmatprep.subr.bf16.mxu0 %v5416_v25 }
 0x1b6   : > { %3912 = vmatprep.subr.bf16.mxu1 %v5419_v26  ;;  %v5498_v26 = vld [vmem:[%s6040_s22 + $0xc54] ss:$8 sps:$4 sm:$0xff]  }
 0x1b8   : > { %3872 = vmatpush1.bf16.msra.mxu0 %v5414_v27  ;;  %v5501_v27 = vld [vmem:[%s6040_s22 + $0xd54] ss:$8 sps:$4 sm:$0xff]  }
 0x1b9   : > { %3913 = vmatpush1.bf16.msra.mxu1 %v5417_v28  ;;  %3873 = vmatprep.subr.bf16.mxu0 %v5422_v18 }
 0x1ba   : > { %3914 = vmatprep.subr.bf16.mxu1 %v5425_v19 }
 0x1bc   : > { %3874 = vmatpush1.bf16.msra.mxu0 %v5420_v29 }
 0x1bd   : > { %3915 = vmatpush1.bf16.msra.mxu1 %v5423_v30  ;;  %3875 = vmatprep.subr.bf16.mxu0 %v5428_v31  ;;  %v5496_v30 = vld [vmem:[%s6040_s22 + $0xc50] ss:$8 sps:$4 sm:$0xff]  }
 0x1be   : > { %3916 = vmatprep.subr.bf16.mxu1 %v5431_v32  ;;  %v5499_v31 = vld [vmem:[%s6040_s22 + $0xd50] ss:$8 sps:$4 sm:$0xff]  }
 0x1c0   : > { %3876 = vmatpush1.bf16.msra.mxu0 %v5426_v33 }
 0x1c1   : > { %3917 = vmatpush1.bf16.msra.mxu1 %v5429_v36  ;;  %3877 = vmatprep.subr.bf16.mxu0 %v5434_v37  ;;  %v5507_v36 = vld [vmem:[%s6040_s22 + $0xd44] ss:$8 sps:$4 sm:$0xff]   ;;  %v5502_v37 = vld [vmem:[%s6040_s22 + $0xc40] ss:$8 sps:$4 sm:$0xff]  }
 0x1c2   : > { %3918 = vmatprep.subr.bf16.mxu1 %v5437_v38  ;;  %v5505_v38 = vld [vmem:[%s6040_s22 + $0xd40] ss:$8 sps:$4 sm:$0xff]  }
 0x1c4   : > { %3878 = vmatpush2.bf16.msra.mxu0 %v5432_v39  ;;  %v5510_v39 = vld [vmem:[%s6040_s22 + $0xc34] ss:$8 sps:$4 sm:$0xff]  }
 0x1c5   : > { %3919 = vmatpush2.bf16.msra.mxu1 %v5435_v40  ;;  %3879 = vmatprep.subr.bf16.mxu0 %v5440_v21  ;;  %v5513_v40 = vld [vmem:[%s6040_s22 + $0xd34] ss:$8 sps:$4 sm:$0xff]   ;;  %v5508_v21 = vld [vmem:[%s6040_s22 + $0xc30] ss:$8 sps:$4 sm:$0xff]  }
 0x1c6   : > { %3920 = vmatprep.subr.bf16.mxu1 %v5443_v24  ;;  %v5511_v24 = vld [vmem:[%s6040_s22 + $0xd30] ss:$8 sps:$4 sm:$0xff]  }
 0x1c8   : > { %3880 = vmatpush2.bf16.msra.mxu0 %v5438_v41  ;;  %v5516_v41 = vld [vmem:[%s6040_s22 + $0xc24] ss:$8 sps:$4 sm:$0xff]  }
 0x1c9   : > { %3921 = vmatpush2.bf16.msra.mxu1 %v5441_v42  ;;  %3881 = vmatprep.subr.bf16.mxu0 %v5446_v43  ;;  %v5519_v42 = vld [vmem:[%s6040_s22 + $0xd24] ss:$8 sps:$4 sm:$0xff]   ;;  %v5514_v43 = vld [vmem:[%s6040_s22 + $0xc20] ss:$8 sps:$4 sm:$0xff]  }
 0x1ca   : > { %3922 = vmatprep.subr.bf16.mxu1 %v5449_v44  ;;  %v5517_v44 = vld [vmem:[%s6040_s22 + $0xd20] ss:$8 sps:$4 sm:$0xff]  }
 0x1cc   : > { %3882 = vmatpush2.bf16.msra.mxu0 %v5444_v45  ;;  %v5522_v45 = vld [vmem:[%s6040_s22 + $0xc14] ss:$8 sps:$4 sm:$0xff]  }
 0x1cd   : > { %3923 = vmatpush2.bf16.msra.mxu1 %v5447_v46  ;;  %3883 = vmatprep.subr.bf16.mxu0 %v5452_v47  ;;  %v5525_v46 = vld [vmem:[%s6040_s22 + $0xd14] ss:$8 sps:$4 sm:$0xff]   ;;  %v5520_v47 = vld [vmem:[%s6040_s22 + $0xc10] ss:$8 sps:$4 sm:$0xff]  }
 0x1ce   : > { %3924 = vmatprep.subr.bf16.mxu1 %v5455_v48  ;;  %v5523_v48 = vld [vmem:[%s6040_s22 + $0xd10] ss:$8 sps:$4 sm:$0xff]  }
 0x1d0   : > { %3884 = vmatpush2.bf16.msra.mxu0 %v5450_v49  ;;  %v5528_v49 = vld [vmem:[%s6040_s22 + $0xc04] ss:$8 sps:$4 sm:$0xff]  }
 0x1d1   : > { %3925 = vmatpush2.bf16.msra.mxu1 %v5453_v51  ;;  %3885 = vmatprep.subr.bf16.mxu0 %v5458_v52  ;;  %v5531_v51 = vld [vmem:[%s6040_s22 + $0xd04] ss:$8 sps:$4 sm:$0xff]   ;;  %v5526_v52 = vld [vmem:[%s6040_s22 + $0xc00] ss:$8 sps:$4 sm:$0xff]  }
 0x1d2   : > { %3926 = vmatprep.subr.bf16.mxu1 %v5461_v53  ;;  %v5529_v53 = vld [vmem:[%s6040_s22 + $0xd00] ss:$8 sps:$4 sm:$0xff]  }
 0x1d4   : > { %3886 = vmatpush2.bf16.msra.mxu0 %v5456_v54  ;;  %v5534_v54 = vld [vmem:[%s6040_s22 + $0xcf4] ss:$8 sps:$4 sm:$0xff]  }
 0x1d5   : > { %3927 = vmatpush2.bf16.msra.mxu1 %v5459_v56  ;;  %3887 = vmatprep.subr.bf16.mxu0 %v5464_v59  ;;  %v5537_v56 = vld [vmem:[%s6040_s22 + $0xdf4] ss:$8 sps:$4 sm:$0xff]   ;;  %v5532_v59 = vld [vmem:[%s6040_s22 + $0xcf0] ss:$8 sps:$4 sm:$0xff]  }
 0x1d6   : > { %3928 = vmatprep.subr.bf16.mxu1 %v5467_v60  ;;  %v5535_v60 = vld [vmem:[%s6040_s22 + $0xdf0] ss:$8 sps:$4 sm:$0xff]  }
 0x1d8   : > { %3888 = vmatpush2.bf16.msra.mxu0 %v5462_v61  ;;  %v5540_v61 = vld [vmem:[%s6040_s22 + $0xce4] ss:$8 sps:$4 sm:$0xff]  }
 0x1d9   : > { %3929 = vmatpush2.bf16.msra.mxu1 %v5465_v62  ;;  %3889 = vmatprep.subr.bf16.mxu0 %v5470_v34  ;;  %v5543_v62 = vld [vmem:[%s6040_s22 + $0xde4] ss:$8 sps:$4 sm:$0xff]   ;;  %v5538_v34 = vld [vmem:[%s6040_s22 + $0xce0] ss:$8 sps:$4 sm:$0xff]  }
 0x1da   : > { %3930 = vmatprep.subr.bf16.mxu1 %v5473_v35  ;;  %v5541_v35 = vld [vmem:[%s6040_s22 + $0xde0] ss:$8 sps:$4 sm:$0xff]  }
 0x1dc   : > { %3890 = vmatpush2.bf16.msra.mxu0 %v5468_v63  ;;  %v5546_v63 = vld [vmem:[%s6040_s22 + $0xcd4] ss:$8 sps:$4 sm:$0xff]  }
 0x1dd   : > { %3931 = vmatpush2.bf16.msra.mxu1 %v5471_v0  ;;  %3891 = vmatprep.subr.bf16.mxu0 %v5476_v1  ;;  %v5549_v0 = vld [vmem:[%s6040_s22 + $0xdd4] ss:$8 sps:$4 sm:$0xff]   ;;  %v5544_v1 = vld [vmem:[%s6040_s22 + $0xcd0] ss:$8 sps:$4 sm:$0xff]  }
 0x1de   : > { %3932 = vmatprep.subr.bf16.mxu1 %v5479_v2  ;;  %v5547_v2 = vld [vmem:[%s6040_s22 + $0xdd0] ss:$8 sps:$4 sm:$0xff]  }
 0x1e0   : > { %3892 = vmatpush2.bf16.msra.mxu0 %v5474_v3  ;;  %v5552_v3 = vld [vmem:[%s6040_s22 + $0xcc4] ss:$8 sps:$4 sm:$0xff]  }
 0x1e1   : > { %3933 = vmatpush2.bf16.msra.mxu1 %v5477_v4  ;;  %3943 = vmatprep.subr.bf16.mxu0 %v5486_v5  ;;  %v5555_v4 = vld [vmem:[%s6040_s22 + $0xdc4] ss:$8 sps:$4 sm:$0xff]   ;;  %v5550_v5 = vld [vmem:[%s6040_s22 + $0xcc0] ss:$8 sps:$4 sm:$0xff]  }
 0x1e2   : > { %3984 = vmatprep.subr.bf16.mxu1 %v5489_v7  ;;  %v5553_v7 = vld [vmem:[%s6040_s22 + $0xdc0] ss:$8 sps:$4 sm:$0xff]  }
 0x1e3   : > { %v3649_v15 = vpop.f32.mrf.mxu0  ;;  %3894 = vmatmul.mubr.bf16.vlgmr.msra.gmra.mxu0 %v4286_v50  ;;  %v5558_v50 = vld [vmem:[%s6040_s22 + $0xcb4] ss:$8 sps:$4 sm:$0xff]  }
 0x1e4   : > { %v3690_v16 = vpop.f32.mrf.mxu1  ;;  %3935 = vmatmul.mubr.bf16.vlgmr.msra.gmra.mxu1 %v4288_v8  ;;  %v3650_v17 = vadd.f32 %v3649_v15, %v6438_v6  ;;  %3944 = vmatpush1.bf16.msra.mxu0 %v5484_v12  ;;  %v5561_v8 = vld [vmem:[%s6040_s22 + $0xdb4] ss:$8 sps:$4 sm:$0xff]   ;;  %v5556_v12 = vld [vmem:[%s6040_s22 + $0xcb0] ss:$8 sps:$4 sm:$0xff]  }
 0x1e5   : > { %3985 = vmatpush1.bf16.msra.mxu1 %v5487_v13  ;;  %v3651_v23 = vpop.f32.mrf.mxu0  ;;  %3945 = vmatprep.subr.bf16.mxu0 %v5492_v55  ;;  %v5559_v13 = vld [vmem:[%s6040_s22 + $0xdb0] ss:$8 sps:$4 sm:$0xff]   ;;  %v5564_v55 = vld [vmem:[%s6040_s22 + $0xca4] ss:$8 sps:$4 sm:$0xff]   ;;  %v5570_v15 = vld [vmem:[%s6040_s22 + $0xc94] ss:$8 sps:$4 sm:$0xff]  }
 0x1e6   : > { %v3692_v25 = vpop.f32.mrf.mxu1  ;;  %3986 = vmatprep.subr.bf16.mxu1 %v5495_v14  ;;  %v6520_v28 = vadd.f32 %v3690_v16, %v3650_v17  ;;  %v3652_v18 = vadd.f32 %v3651_v23, %v6441_v9  ;;  %3975 = vmatprep.mubr.bf16.mxu0 %v4291_v57  ;;  %v5504_v9 = vld [vmem:[%s6040_s22 + $0xc44] ss:$8 sps:$4 sm:$0xff]   ;;  %v5562_v57 = vld [vmem:[%s6040_s22 + $0xca0] ss:$8 sps:$4 sm:$0xff]   ;;  %v5573_v16 = vld [vmem:[%s6040_s22 + $0xd94] ss:$8 sps:$4 sm:$0xff]  }
 0x1e7   : > { %4016 = vmatprep.mubr.bf16.mxu1 %v4293_v58  ;;  %v3653_v6 = vpop.f32.mrf.mxu0  ;;  %v5567_v14 = vld [vmem:[%s6040_s22 + $0xda4] ss:$8 sps:$4 sm:$0xff]   ;;  %v5565_v58 = vld [vmem:[%s6040_s22 + $0xda0] ss:$8 sps:$4 sm:$0xff]   ;;  %v5568_v17 = vld [vmem:[%s6040_s22 + $0xc90] ss:$8 sps:$4 sm:$0xff]  }
 0x1e8   : > { %v3694_v19 = vpop.f32.mrf.mxu1  ;;  %v6523_v29 = vadd.f32 %v3692_v25, %v3652_v18  ;;  %3946 = vmatpush1.bf16.msra.mxu0 %v5490_v20  ;;  %v5571_v20 = vld [vmem:[%s6040_s22 + $0xd90] ss:$8 sps:$4 sm:$0xff]   ;;  %v5579_v23 = vld [vmem:[%s6040_s22 + $0xd84] ss:$8 sps:$4 sm:$0xff]   ;;  %v5574_v25 = vld [vmem:[%s6040_s22 + $0xc80] ss:$8 sps:$4 sm:$0xff]   ;;  %v4290_v6 = vcombine.low %v6503_v10, %v6503_v10 }
 0x1e9   : > { %3987 = vmatpush1.bf16.msra.mxu1 %v5493_v22  ;;  %v3654_v32 = vpop.f32.mrf.mxu0  ;;  %3947 = vmatprep.subr.bf16.mxu0 %v5498_v26  ;;  %v5576_v22 = vld [vmem:[%s6040_s22 + $0xc84] ss:$8 sps:$4 sm:$0xff]   ;;  %v5577_v26 = vld [vmem:[%s6040_s22 + $0xd80] ss:$8 sps:$4 sm:$0xff]   ;;  %v5589_v18 = vld [vmem:[%s6040_s22 + $0xf74] ss:$8 sps:$4 sm:$0xff]   ;;  %v4292_v19 = vcombine.low %v6505_v11, %v6505_v11 }
 0x1ea   : > { %v3695_v33 = vpop.f32.mrf.mxu1  ;;  %3988 = vmatprep.subr.bf16.mxu1 %v5501_v27  ;;  %v5586_v27 = vld [vmem:[%s6040_s22 + $0xe74] ss:$8 sps:$4 sm:$0xff]   ;;  %v5584_v32 = vld [vmem:[%s6040_s22 + $0xe70] ss:$8 sps:$4 sm:$0xff]  }
 0x1eb   : > { %v5587_v33 = vld [vmem:[%s6040_s22 + $0xf70] ss:$8 sps:$4 sm:$0xff]  }
 0x1ec   : > { %3948 = vmatpush1.bf16.msra.mxu0 %v5496_v30  ;;  %v6585_v30 = vld [vmem:[#allocation2 + $0x70] sm:$0xff] }
 0x1ed   : > { %3989 = vmatpush1.bf16.msra.mxu1 %v5499_v31  ;;  %3949 = vmatprep.subr.bf16.mxu0 %v5504_v9  ;;  %v6587_v31 = vld [vmem:[#allocation2 + $0x78] sm:$0xff]  ;;  %v5592_v9 = vld [vmem:[%s6040_s22 + $0xe64] ss:$8 sps:$4 sm:$0xff]   ;;  %v4295_v10 = vcombine.high %v6585_v30, %v6585_v30 }
 0x1ee   : > { %3990 = vmatprep.subr.bf16.mxu1 %v5507_v36  ;;  %v5595_v36 = vld [vmem:[%s6040_s22 + $0xf64] ss:$8 sps:$4 sm:$0xff]   ;;  %v4297_v11 = vcombine.high %v6587_v31, %v6587_v31 }
 0x1f0   : > { %3950 = vmatpush1.bf16.msra.mxu0 %v5502_v37 }
 0x1f1   : > { %3991 = vmatpush1.bf16.msra.mxu1 %v5505_v38  ;;  %3951 = vmatprep.subr.bf16.mxu0 %v5510_v39 }
 0x1f2   : > { %3992 = vmatprep.subr.bf16.mxu1 %v5513_v40  ;;  %v5590_v40 = vld [vmem:[%s6040_s22 + $0xe60] ss:$8 sps:$4 sm:$0xff]  }
 0x1f4   : > { %3952 = vmatpush1.bf16.msra.mxu0 %v5508_v21  ;;  %v5593_v21 = vld [vmem:[%s6040_s22 + $0xf60] ss:$8 sps:$4 sm:$0xff]  }
 0x1f5   : > { %3993 = vmatpush1.bf16.msra.mxu1 %v5511_v24  ;;  %3953 = vmatprep.subr.bf16.mxu0 %v5516_v41 }
 0x1f6   : > { %3994 = vmatprep.subr.bf16.mxu1 %v5519_v42  ;;  %v5598_v42 = vld [vmem:[%s6040_s22 + $0xe54] ss:$8 sps:$4 sm:$0xff]  }
 0x1f8   : > { %3954 = vmatpush1.bf16.msra.mxu0 %v5514_v43  ;;  %v5601_v43 = vld [vmem:[%s6040_s22 + $0xf54] ss:$8 sps:$4 sm:$0xff]  }
 0x1f9   : > { %3995 = vmatpush1.bf16.msra.mxu1 %v5517_v44  ;;  %3955 = vmatprep.subr.bf16.mxu0 %v5522_v45 }
 0x1fa   : > { %3996 = vmatprep.subr.bf16.mxu1 %v5525_v46 }
 0x1fc   : > { %3956 = vmatpush1.bf16.msra.mxu0 %v5520_v47 }
 0x1fd   : > { %3997 = vmatpush1.bf16.msra.mxu1 %v5523_v48  ;;  %3957 = vmatprep.subr.bf16.mxu0 %v5528_v49  ;;  %v5596_v48 = vld [vmem:[%s6040_s22 + $0xe50] ss:$8 sps:$4 sm:$0xff]  }
 0x1fe   : > { %3998 = vmatprep.subr.bf16.mxu1 %v5531_v51  ;;  %v5599_v49 = vld [vmem:[%s6040_s22 + $0xf50] ss:$8 sps:$4 sm:$0xff]  }
 0x200   : > { %3958 = vmatpush1.bf16.msra.mxu0 %v5526_v52 }
 0x201   : > { %3999 = vmatpush1.bf16.msra.mxu1 %v5529_v53  ;;  %3959 = vmatprep.subr.bf16.mxu0 %v5534_v54  ;;  %v5607_v53 = vld [vmem:[%s6040_s22 + $0xf44] ss:$8 sps:$4 sm:$0xff]   ;;  %v5602_v54 = vld [vmem:[%s6040_s22 + $0xe40] ss:$8 sps:$4 sm:$0xff]  }
 0x202   : > { %4000 = vmatprep.subr.bf16.mxu1 %v5537_v56  ;;  %v5605_v56 = vld [vmem:[%s6040_s22 + $0xf40] ss:$8 sps:$4 sm:$0xff]  }
 0x204   : > { %3960 = vmatpush2.bf16.msra.mxu0 %v5532_v59  ;;  %v5610_v59 = vld [vmem:[%s6040_s22 + $0xe34] ss:$8 sps:$4 sm:$0xff]  }
 0x205   : > { %4001 = vmatpush2.bf16.msra.mxu1 %v5535_v60  ;;  %3961 = vmatprep.subr.bf16.mxu0 %v5540_v61  ;;  %v5613_v60 = vld [vmem:[%s6040_s22 + $0xf34] ss:$8 sps:$4 sm:$0xff]   ;;  %v5608_v61 = vld [vmem:[%s6040_s22 + $0xe30] ss:$8 sps:$4 sm:$0xff]  }
 0x206   : > { %4002 = vmatprep.subr.bf16.mxu1 %v5543_v62  ;;  %v5611_v62 = vld [vmem:[%s6040_s22 + $0xf30] ss:$8 sps:$4 sm:$0xff]  }
 0x208   : > { %3962 = vmatpush2.bf16.msra.mxu0 %v5538_v34  ;;  %v5616_v34 = vld [vmem:[%s6040_s22 + $0xe24] ss:$8 sps:$4 sm:$0xff]  }
 0x209   : > { %4003 = vmatpush2.bf16.msra.mxu1 %v5541_v35  ;;  %3963 = vmatprep.subr.bf16.mxu0 %v5546_v63  ;;  %v5619_v35 = vld [vmem:[%s6040_s22 + $0xf24] ss:$8 sps:$4 sm:$0xff]   ;;  %v5614_v63 = vld [vmem:[%s6040_s22 + $0xe20] ss:$8 sps:$4 sm:$0xff]  }
 0x20a   : > { %4004 = vmatprep.subr.bf16.mxu1 %v5549_v0  ;;  %v5617_v0 = vld [vmem:[%s6040_s22 + $0xf20] ss:$8 sps:$4 sm:$0xff]  }
 0x20c   : > { %3964 = vmatpush2.bf16.msra.mxu0 %v5544_v1  ;;  %v5622_v1 = vld [vmem:[%s6040_s22 + $0xe14] ss:$8 sps:$4 sm:$0xff]  }
 0x20d   : > { %4005 = vmatpush2.bf16.msra.mxu1 %v5547_v2  ;;  %3965 = vmatprep.subr.bf16.mxu0 %v5552_v3  ;;  %v5625_v2 = vld [vmem:[%s6040_s22 + $0xf14] ss:$8 sps:$4 sm:$0xff]   ;;  %v5620_v3 = vld [vmem:[%s6040_s22 + $0xe10] ss:$8 sps:$4 sm:$0xff]  }
 0x20e   : > { %4006 = vmatprep.subr.bf16.mxu1 %v5555_v4  ;;  %v5623_v4 = vld [vmem:[%s6040_s22 + $0xf10] ss:$8 sps:$4 sm:$0xff]  }
 0x210   : > { %3966 = vmatpush2.bf16.msra.mxu0 %v5550_v5  ;;  %v5628_v5 = vld [vmem:[%s6040_s22 + $0xe04] ss:$8 sps:$4 sm:$0xff]  }
 0x211   : > { %4007 = vmatpush2.bf16.msra.mxu1 %v5553_v7  ;;  %3967 = vmatprep.subr.bf16.mxu0 %v5558_v50  ;;  %v5631_v7 = vld [vmem:[%s6040_s22 + $0xf04] ss:$8 sps:$4 sm:$0xff]   ;;  %v5626_v50 = vld [vmem:[%s6040_s22 + $0xe00] ss:$8 sps:$4 sm:$0xff]  }
 0x212   : > { %4008 = vmatprep.subr.bf16.mxu1 %v5561_v8  ;;  %v5629_v8 = vld [vmem:[%s6040_s22 + $0xf00] ss:$8 sps:$4 sm:$0xff]  }
 0x214   : > { %3968 = vmatpush2.bf16.msra.mxu0 %v5556_v12  ;;  %v5634_v12 = vld [vmem:[%s6040_s22 + $0xef4] ss:$8 sps:$4 sm:$0xff]  }
 0x215   : > { %4009 = vmatpush2.bf16.msra.mxu1 %v5559_v13  ;;  %3969 = vmatprep.subr.bf16.mxu0 %v5564_v55  ;;  %v5637_v13 = vld [vmem:[%s6040_s22 + $0xff4] ss:$8 sps:$4 sm:$0xff]   ;;  %v5632_v55 = vld [vmem:[%s6040_s22 + $0xef0] ss:$8 sps:$4 sm:$0xff]  }
 0x216   : > { %4010 = vmatprep.subr.bf16.mxu1 %v5567_v14  ;;  %v5635_v14 = vld [vmem:[%s6040_s22 + $0xff0] ss:$8 sps:$4 sm:$0xff]  }
 0x218   : > { %3970 = vmatpush2.bf16.msra.mxu0 %v5562_v57  ;;  %v5640_v57 = vld [vmem:[%s6040_s22 + $0xee4] ss:$8 sps:$4 sm:$0xff]  }
 0x219   : > { %4011 = vmatpush2.bf16.msra.mxu1 %v5565_v58  ;;  %3971 = vmatprep.subr.bf16.mxu0 %v5570_v15  ;;  %v5643_v58 = vld [vmem:[%s6040_s22 + $0xfe4] ss:$8 sps:$4 sm:$0xff]   ;;  %v5638_v15 = vld [vmem:[%s6040_s22 + $0xee0] ss:$8 sps:$4 sm:$0xff]  }
 0x21a   : > { %4012 = vmatprep.subr.bf16.mxu1 %v5573_v16  ;;  %v5641_v16 = vld [vmem:[%s6040_s22 + $0xfe0] ss:$8 sps:$4 sm:$0xff]  }
 0x21c   : > { %3972 = vmatpush2.bf16.msra.mxu0 %v5568_v17  ;;  %v5646_v17 = vld [vmem:[%s6040_s22 + $0xed4] ss:$8 sps:$4 sm:$0xff]  }
 0x21d   : > { %4013 = vmatpush2.bf16.msra.mxu1 %v5571_v20  ;;  %3973 = vmatprep.subr.bf16.mxu0 %v5576_v22  ;;  %v5649_v20 = vld [vmem:[%s6040_s22 + $0xfd4] ss:$8 sps:$4 sm:$0xff]   ;;  %v5644_v22 = vld [vmem:[%s6040_s22 + $0xed0] ss:$8 sps:$4 sm:$0xff]  }
 0x21e   : > { %4014 = vmatprep.subr.bf16.mxu1 %v5579_v23  ;;  %v5647_v23 = vld [vmem:[%s6040_s22 + $0xfd0] ss:$8 sps:$4 sm:$0xff]  }
 0x220   : > { %3974 = vmatpush2.bf16.msra.mxu0 %v5574_v25  ;;  %v5652_v25 = vld [vmem:[%s6040_s22 + $0xec4] ss:$8 sps:$4 sm:$0xff]  }
 0x221   : > { %4015 = vmatpush2.bf16.msra.mxu1 %v5577_v26  ;;  %4025 = vmatprep.subr.bf16.mxu0 %v5586_v27  ;;  %v5655_v26 = vld [vmem:[%s6040_s22 + $0xfc4] ss:$8 sps:$4 sm:$0xff]   ;;  %v5650_v27 = vld [vmem:[%s6040_s22 + $0xec0] ss:$8 sps:$4 sm:$0xff]  }
 0x222   : > { %4066 = vmatprep.subr.bf16.mxu1 %v5589_v18  ;;  %v5653_v18 = vld [vmem:[%s6040_s22 + $0xfc0] ss:$8 sps:$4 sm:$0xff]  }
 0x223   : > { %v3731_v37 = vpop.f32.mrf.mxu0  ;;  %3976 = vmatmul.mubr.bf16.vlgmr.msra.gmra.mxu0 %v4290_v6  ;;  %v5658_v6 = vld [vmem:[%s6040_s22 + $0xeb4] ss:$8 sps:$4 sm:$0xff]  }
 0x224   : > { %v3772_v38 = vpop.f32.mrf.mxu1  ;;  %4017 = vmatmul.mubr.bf16.vlgmr.msra.gmra.mxu1 %v4292_v19  ;;  %v3732_v39 = vadd.f32 %v3731_v37, %v6520_v28  ;;  %4026 = vmatpush1.bf16.msra.mxu0 %v5584_v32  ;;  %v5661_v19 = vld [vmem:[%s6040_s22 + $0xfb4] ss:$8 sps:$4 sm:$0xff]   ;;  %v5656_v32 = vld [vmem:[%s6040_s22 + $0xeb0] ss:$8 sps:$4 sm:$0xff]  }
 0x225   : > { %4067 = vmatpush1.bf16.msra.mxu1 %v5587_v33  ;;  %v3733_v24 = vpop.f32.mrf.mxu0  ;;  %4027 = vmatprep.subr.bf16.mxu0 %v5592_v9  ;;  %v5659_v33 = vld [vmem:[%s6040_s22 + $0xfb0] ss:$8 sps:$4 sm:$0xff]   ;;  %v5664_v9 = vld [vmem:[%s6040_s22 + $0xea4] ss:$8 sps:$4 sm:$0xff]   ;;  %v5670_v37 = vld [vmem:[%s6040_s22 + $0xe94] ss:$8 sps:$4 sm:$0xff]  }
 0x226   : > { %v3774_v41 = vpop.f32.mrf.mxu1  ;;  %4068 = vmatprep.subr.bf16.mxu1 %v5595_v36  ;;  %v6602_v44 = vadd.f32 %v3772_v38, %v3732_v39  ;;  %v3734_v45 = vadd.f32 %v3733_v24, %v6523_v29  ;;  %4057 = vmatprep.mubr.bf16.mxu0 %v4295_v10  ;;  %v5604_v29 = vld [vmem:[%s6040_s22 + $0xe44] ss:$8 sps:$4 sm:$0xff]   ;;  %v5662_v10 = vld [vmem:[%s6040_s22 + $0xea0] ss:$8 sps:$4 sm:$0xff]   ;;  %v5673_v38 = vld [vmem:[%s6040_s22 + $0xf94] ss:$8 sps:$4 sm:$0xff]  }
 0x227   : > { %4098 = vmatprep.mubr.bf16.mxu1 %v4297_v11  ;;  %v3735_v28 = vpop.f32.mrf.mxu0  ;;  %v5667_v36 = vld [vmem:[%s6040_s22 + $0xfa4] ss:$8 sps:$4 sm:$0xff]   ;;  %v5665_v11 = vld [vmem:[%s6040_s22 + $0xfa0] ss:$8 sps:$4 sm:$0xff]   ;;  %v5668_v39 = vld [vmem:[%s6040_s22 + $0xe90] ss:$8 sps:$4 sm:$0xff]  }
 0x228   : > { %v3776_v46 = vpop.f32.mrf.mxu1  ;;  %v6605_v47 = vadd.f32 %v3774_v41, %v3734_v45  ;;  %4028 = vmatpush1.bf16.msra.mxu0 %v5590_v40  ;;  %v5671_v40 = vld [vmem:[%s6040_s22 + $0xf90] ss:$8 sps:$4 sm:$0xff]   ;;  %v5679_v24 = vld [vmem:[%s6040_s22 + $0xf84] ss:$8 sps:$4 sm:$0xff]   ;;  %v5674_v41 = vld [vmem:[%s6040_s22 + $0xe80] ss:$8 sps:$4 sm:$0xff]   ;;  %v4296_v45 = vcombine.low %v6587_v31, %v6587_v31 }
 0x229   : > { %4069 = vmatpush1.bf16.msra.mxu1 %v5593_v21  ;;  %v3736_v51 = vpop.f32.mrf.mxu0  ;;  %4029 = vmatprep.subr.bf16.mxu0 %v5598_v42  ;;  %v5676_v21 = vld [vmem:[%s6040_s22 + $0xe84] ss:$8 sps:$4 sm:$0xff]   ;;  %v5677_v42 = vld [vmem:[%s6040_s22 + $0xf80] ss:$8 sps:$4 sm:$0xff]  }
 0x22a   : > { %v3777_v52 = vpop.f32.mrf.mxu1  ;;  %4070 = vmatprep.subr.bf16.mxu1 %v5601_v43  ;;  %v4294_v43 = vcombine.low %v6585_v30, %v6585_v30 }
 0x22c   : > { %4030 = vmatpush1.bf16.msra.mxu0 %v5596_v48 }
 0x22d   : > { %4071 = vmatpush1.bf16.msra.mxu1 %v5599_v49  ;;  %4031 = vmatprep.subr.bf16.mxu0 %v5604_v29 }
 0x22e   : > { %4072 = vmatprep.subr.bf16.mxu1 %v5607_v53 }
 0x230   : > { %4032 = vmatpush1.bf16.msra.mxu0 %v5602_v54 }
 0x231   : > { %4073 = vmatpush1.bf16.msra.mxu1 %v5605_v56  ;;  %4033 = vmatprep.subr.bf16.mxu0 %v5610_v59 }
 0x232   : > { %4074 = vmatprep.subr.bf16.mxu1 %v5613_v60 }
 0x234   : > { %4034 = vmatpush1.bf16.msra.mxu0 %v5608_v61 }
 0x235   : > { %4075 = vmatpush1.bf16.msra.mxu1 %v5611_v62  ;;  %4035 = vmatprep.subr.bf16.mxu0 %v5616_v34 }
 0x236   : > { %4076 = vmatprep.subr.bf16.mxu1 %v5619_v35 }
 0x238   : > { %4036 = vmatpush1.bf16.msra.mxu0 %v5614_v63 }
 0x239   : > { %4077 = vmatpush1.bf16.msra.mxu1 %v5617_v0  ;;  %4037 = vmatprep.subr.bf16.mxu0 %v5622_v1 }
 0x23a   : > { %4078 = vmatprep.subr.bf16.mxu1 %v5625_v2 }
 0x23c   : > { %4038 = vmatpush1.bf16.msra.mxu0 %v5620_v3 }
 0x23d   : > { %4079 = vmatpush1.bf16.msra.mxu1 %v5623_v4  ;;  %4039 = vmatprep.subr.bf16.mxu0 %v5628_v5 }
 0x23e   : > { %4080 = vmatprep.subr.bf16.mxu1 %v5631_v7 }
 0x240   : > { %4040 = vmatpush1.bf16.msra.mxu0 %v5626_v50 }
 0x241   : > { %4081 = vmatpush1.bf16.msra.mxu1 %v5629_v8  ;;  %4041 = vmatprep.subr.bf16.mxu0 %v5634_v12 }
 0x242   : > { %4082 = vmatprep.subr.bf16.mxu1 %v5637_v13 }
 0x244   : > { %4042 = vmatpush2.bf16.msra.mxu0 %v5632_v55 }
 0x245   : > { %4083 = vmatpush2.bf16.msra.mxu1 %v5635_v14  ;;  %4043 = vmatprep.subr.bf16.mxu0 %v5640_v57 }
 0x246   : > { %4084 = vmatprep.subr.bf16.mxu1 %v5643_v58 }
 0x248   : > { %4044 = vmatpush2.bf16.msra.mxu0 %v5638_v15 }
 0x249   : > { %4085 = vmatpush2.bf16.msra.mxu1 %v5641_v16  ;;  %4045 = vmatprep.subr.bf16.mxu0 %v5646_v17 }
 0x24a   : > { %4086 = vmatprep.subr.bf16.mxu1 %v5649_v20 }
 0x24c   : > { %4046 = vmatpush2.bf16.msra.mxu0 %v5644_v22 }
 0x24d   : > { %4087 = vmatpush2.bf16.msra.mxu1 %v5647_v23  ;;  %4047 = vmatprep.subr.bf16.mxu0 %v5652_v25 }
 0x24e   : > { %4088 = vmatprep.subr.bf16.mxu1 %v5655_v26 }
 0x250   : > { %4048 = vmatpush2.bf16.msra.mxu0 %v5650_v27 }
 0x251   : > { %4089 = vmatpush2.bf16.msra.mxu1 %v5653_v18  ;;  %4049 = vmatprep.subr.bf16.mxu0 %v5658_v6 }
 0x252   : > { %4090 = vmatprep.subr.bf16.mxu1 %v5661_v19 }
 0x254   : > { %4050 = vmatpush2.bf16.msra.mxu0 %v5656_v32 }
 0x255   : > { %4091 = vmatpush2.bf16.msra.mxu1 %v5659_v33  ;;  %4051 = vmatprep.subr.bf16.mxu0 %v5664_v9 }
 0x256   : > { %4092 = vmatprep.subr.bf16.mxu1 %v5667_v36 }
 0x258   : > { %4052 = vmatpush2.bf16.msra.mxu0 %v5662_v10 }
 0x259   : > { %4093 = vmatpush2.bf16.msra.mxu1 %v5665_v11  ;;  %4053 = vmatprep.subr.bf16.mxu0 %v5670_v37 }
 0x25a   : > { %4094 = vmatprep.subr.bf16.mxu1 %v5673_v38 }
 0x25c   : > { %4054 = vmatpush2.bf16.msra.mxu0 %v5668_v39 }
 0x25d   : > { %4095 = vmatpush2.bf16.msra.mxu1 %v5671_v40  ;;  %4055 = vmatprep.subr.bf16.mxu0 %v5676_v21 }
 0x25e   : > { %4096 = vmatprep.subr.bf16.mxu1 %v5679_v24 }
 0x260   : > { %4056 = vmatpush2.bf16.msra.mxu0 %v5674_v41 }
 0x261   : > { %4097 = vmatpush2.bf16.msra.mxu1 %v5677_v42 }
 0x263   : > { %v3813_v28 = vpop.f32.mrf.mxu0  ;;  %4058 = vmatmul.mubr.bf16.vlgmr.msra.gmra.mxu0 %v4294_v43 }
 0x264   : > { %v3854_v46 = vpop.f32.mrf.mxu1  ;;  %4099 = vmatmul.mubr.bf16.vlgmr.msra.gmra.mxu1 %v4296_v45  ;;  %v3814_v48 = vadd.f32 %v3813_v28, %v6602_v44 }
 0x265   : > { %v3815_v49 = vpop.f32.mrf.mxu0 }
 0x266   : > { %v3856_v51 = vpop.f32.mrf.mxu1  ;;  %v3855_v52 = vadd.f32 %v3854_v46, %v3814_v48  ;;  %v3816_v29 = vadd.f32 %v3815_v49, %v6605_v47 }
 0x267   : > { %v3817_v53 = vpop.f32.mrf.mxu0 }
 0x268   : > { %v3858_v54 = vpop.f32.mrf.mxu1  ;;  %v3857_v56 = vadd.f32 %v3856_v51, %v3816_v29 }
 0x269   : > { %v3818_v30 = vpop.f32.mrf.mxu0 }
 0x26a   : > { %v3859_v59 = vpop.f32.mrf.mxu1 }
 0x2a3   : > { %v3895_v60 = vpop.f32.mrf.mxu0 }
 0x2a4   : > { %v3936_v31 = vpop.f32.mrf.mxu1  ;;  %v3896_v61 = vadd.f32 %v3895_v60, %v3855_v52 }
 0x2a5   : > { %v3897_v62 = vpop.f32.mrf.mxu0 }
 0x2a6   : > { %v3938_v34 = vpop.f32.mrf.mxu1  ;;  %v3937_v35 = vadd.f32 %v3936_v31, %v3896_v61  ;;  %v3898_v63 = vadd.f32 %v3897_v62, %v3857_v56 }
 0x2a7   : > { %v3899_v0 = vpop.f32.mrf.mxu0 }
 0x2a8   : > { %v3940_v1 = vpop.f32.mrf.mxu1  ;;  %v3939_v44 = vadd.f32 %v3938_v34, %v3898_v63 }
 0x2a9   : > { %v3900_v2 = vpop.f32.mrf.mxu0 }
 0x2aa   : > { %v3941_v3 = vpop.f32.mrf.mxu1 }
 0x2e3   : > { %v3977_v4 = vpop.f32.mrf.mxu0 }
 0x2e4   : > { %v4018_v5 = vpop.f32.mrf.mxu1  ;;  %v3978_v47 = vadd.f32 %v3977_v4, %v3937_v35 }
 0x2e5   : > { %v3979_v7 = vpop.f32.mrf.mxu0 }
 0x2e6   : > { %v4020_v50 = vpop.f32.mrf.mxu1  ;;  %v4019_v8 = vadd.f32 %v4018_v5, %v3978_v47  ;;  %v3980_v57 = vadd.f32 %v3979_v7, %v3939_v44 }
 0x2e7   : > { %v3981_v12 = vpop.f32.mrf.mxu0 }
 0x2e8   : > { %v4022_v13 = vpop.f32.mrf.mxu1  ;;  %v4021_v16 = vadd.f32 %v4020_v50, %v3980_v57 }
 0x2e9   : > { %v3982_v55 = vpop.f32.mrf.mxu0 }
 0x2ea   : > { %v4023_v14 = vpop.f32.mrf.mxu1 }
 0x323   : > { %v4059_v58 = vpop.f32.mrf.mxu0 }
 0x324   : > { %v4100_v15 = vpop.f32.mrf.mxu1  ;;  %v4060_v17 = vadd.f32 %v4059_v58, %v4019_v8 }
 0x325   : > { %v4061_v20 = vpop.f32.mrf.mxu0 }
 0x326   : > { %v4102_v22 = vpop.f32.mrf.mxu1  ;;  %v4101_v23 = vadd.f32 %v4100_v15, %v4060_v17  ;;  %v4062_v25 = vadd.f32 %v4061_v20, %v4021_v16 }
 0x327   : > { %v4063_v26 = vpop.f32.mrf.mxu0 }
 0x328   : > { %v4104_v27 = vpop.f32.mrf.mxu1  ;;  %v4107_v18 = vand.u32 2147483647, %v4101_v23  ;;  %v4103_v6 = vadd.f32 %v4102_v22, %v4062_v25  ;;  %vm4115_vm0 = vcmp.ge.f32.partialorder %v4101_v23, 0.0 }
 0x329   : > { %v4064_v19 = vpop.f32.mrf.mxu0 }
 0x32a   : > { %v4105_v32 = vpop.f32.mrf.mxu1  ;;  %v4109_v33 = vsub.f32 0.0, %v4107_v18  ;;  %v4108_v9 = vand.u32 2147483647, %v4103_v6  ;;  %vm4116_vm1 = vcmp.ge.f32.partialorder %v4103_v6, 0.0 }
 0x32c   : > { %v4111_v36 = vmul.f32 1.442695, %v4109_v33  ;;  %v4110_v10 = vsub.f32 0.0, %v4108_v9 }
 0x32e   : > { %5684 = vpow2.f32 %v4111_v36  ;;  %v4113_v11 = vmul.f32 1.442695, %v4110_v10 }
 0x330   : > { %5686 = vpow2.f32 %v4113_v11 }
 0x33b   : > { %v5685_v37 = vpop.eup %5684 }
 0x33c   : > { %v4119_v38 = vadd.f32 1.0, %v5685_v37  ;;  %v4117_v41 = vsel %vm4115_vm0, 1.0, %v5685_v37 }
 0x33d   : > { %v5687_v39 = vpop.eup %5686 }
 0x33e   : > { %5688 = vrcp.f32 %v4119_v38  ;;  %v4120_v40 = vadd.f32 1.0, %v5687_v39  ;;  %v4118_v42 = vsel %vm4116_vm1, 1.0, %v5687_v39 }
 0x340   : > { %5690 = vrcp.f32 %v4120_v40 }
 0x34b   : > { %v5689_v21 = vpop.eup %5688 }
 0x34c   : > { %v4123_v43 = vmul.f32 %v5689_v21, %v4117_v41 }
 0x34d   : > { %v5691_v24 = vpop.eup %5690 }
 0x34e   : > { %v4124_v45 = vmul.f32 %v5691_v24, %v4118_v42 }
 0x350   : > { %v4818_v28 = vpack.c.bf16 %v4124_v45, %v4123_v43 }
 0x352   : > { %4133 = vst [vmem:[%s236_s5] sm:$0xff] %v4818_v28 }
 0x353   : > { %5787 = shalt.err (!%p5784_p1)
}
 0x354   : > { %s5788_s30 = scalar_lea.hbm %s4147_s9, 128  ;;  %s5792_s17 = scalar_lea.hbm %s6705_s3, 512 }
 0x355   : > { %p5789_p8 = scmp.ne.s32.totalorder %s4147_s9, %s5788_s30  ;;  %p5793_p6 = scmp.lt.s32.totalorder %s4147_s9, %s6705_s3 }
 0x356   : > { %p5794_p0 = scmp.lt.s32.totalorder %s5792_s17, %s5788_s30 }
 0x357   : > { %p5790_p10 = pnand %p5789_p8, %p6722_p7 }
 0x358   : > { %p5795_p9 = por %p5794_p0, %p5793_p6 }
 0x359   : > { %p5791_p5 = pneg %p5790_p10 }
 0x35b   : > { %p5796_p12 = pnand %p5795_p9, %p5791_p5 }
 0x35d   : > { %5799 = shalt.err (!%p5796_p12)
}
 0x35e   : > { %4828 = dma.vmem_to_hbm [thread:$0]  (%p6722_p7), %s4150_s7, 128, %s4147_s9, %s4135_s21  }
 0x35f PF: > { %p4848_p11 = scmp.ge.s32.totalorder %s5842_s15, 2  ;;  %s4161_s4 = sand.u32 1, %s5830_s12  }
 0x360   : > { %p6723_p3 = scmp.ne.s32.totalorder %s6714_s27, 0  ;;  %s4162_s6 = scalar_lea.sflag [#allocation4], %s4161_s4 }
 0x362   : > { %p4842_p4 = pnand %p4848_p11, %p6723_p3 }
 0x364   : > { %p4843_p13 = pneg %p4842_p4 }
 0x366   : > { %5825 = dma.done.wait (%p4843_p13), %s4162_s6, 128  }
 0x367   : > { %5827 = vsyncadd (%p4843_p13), %s4162_s6, 4294967168  ;;  %p17_p2 = scmp.ge.s32.totalorder %s5891_s16, 6   ;;  %s6724_s12 = smov %s5834_s13 }
 0x368   : > { %s6725_s13 = smov %s5838_s14  ;;  %s6726_s14 = smov %s5901_s19 }
 0x369   : > { %s6727_s15 = smov %s5891_s16  ;;  %19 = sbr.rel (!%p17_p2) target bundleno = 6 (0x6), region = 93 }
 0x36e   :  { %4167 = vsyncpa [#allocation3], 1 }
 0x36f   :  { %4169 = vsyncpa [#allocation3 + $0x1], 1 }
 0x370   :  { %4170 = vsyncpa [#allocation6], 1 }
 0x371   :  { %4172 = vsyncpa [#allocation6 + $0x1], 1 }
 0x372   :  { %4173 = vsyncpa [#allocation4], 1 }
 0x373   :  { %4175 = vsyncpa [#allocation4 + $0x1], 1 }

</bundles_post_ra>
